<compile_context>
chip_gen: v5e
topology: v5e:2x2
jax: 0.10.0
libtpu: 0.0.40
codegen_flags: <defaults>
</compile_context>

<pallas_src>
import jax
import jax.numpy as jnp
from jax import lax
from jax.experimental import pallas as pl
from jax.experimental.pallas import tpu as pltpu  # noqa: F401  (TPU backend assumed)


# ---------------------------------------------------------------------------
# Pallas kernels
# ---------------------------------------------------------------------------

def _conv1_pool_relu_kernel(a_ref, w_ref, b_ref, o_ref):
    """relu(maxpool2x2(conv1(x) + b)) in one kernel.

    a: (4, 32, M) bf16  im2col taps; rows = padded (ci,ki,kj), cols = (n, oh/2, ow/2)
    w: (6, 32)    bf16  conv1 weight (K padded 25 -> 32)
    b: (6, 1)     f32
    o: (6, M)     bf16  spatial-major (lane-dense) pooled activation
    """
    w = w_ref[...]
    acc = jnp.dot(w, a_ref[0], preferred_element_type=jnp.float32)
    for d in range(1, 4):
        acc = jnp.maximum(acc, jnp.dot(w, a_ref[d], preferred_element_type=jnp.float32))
    o_ref[...] = jnp.maximum(acc + b_ref[...], 0.0).astype(o_ref.dtype)


def _conv2_pool_fc_kernel(a_ref, w2_ref, b2_ref, w1r_ref, b1_ref, wf2_ref, bf2_ref,
                          wf3_ref, bf3_ref, o_ref):
    """relu(maxpool2x2(conv2 + b)) -> fc1+relu -> fc2+relu -> fc3, all in one kernel.

    a:   (4, 25*N, 160) bf16  conv2 im2col taps; rows = (s=oh*5+ow, n), cols = padded (ci,ki,kj)
    w2:  (160, 16) bf16     b2:  (1, 16)  f32
    w1r: (25, 16, 120) bf16 (fc1 weight rearranged as [s, c, k])
    b1:  (1, 120) f32
    wf2: (120, 84) bf16     bf2: (1, 84)  f32
    wf3: (84, 10)  bf16     bf3: (1, 10)  f32
    o:   (N, 10)   f32
    """
    n = o_ref.shape[0]

    w2 = w2_ref[...]
    y = jnp.dot(a_ref[0], w2, preferred_element_type=jnp.float32)
    for d in range(1, 4):
        y = jnp.maximum(y, jnp.dot(a_ref[d], w2, preferred_element_type=jnp.float32))
    p2 = jnp.maximum(y + b2_ref[...], 0.0)                      # (25*N, 16) pooled relu conv2

    # fc1 as a sum over the 25 pooled spatial positions: every operand stays 2-D,
    # so no minor-dim reshape/transpose is needed inside the kernel.
    h1 = jnp.zeros((n, 120), jnp.float32)
    for s in range(25):
        blk = p2[s * n:(s + 1) * n, :].astype(jnp.bfloat16)     # (N, 16)
        h1 = h1 + jnp.dot(blk, w1r_ref[s], preferred_element_type=jnp.float32)
    h1 = jnp.maximum(h1 + b1_ref[...], 0.0)                     # (N, 120)

    h2 = jnp.dot(h1.astype(jnp.bfloat16), wf2_ref[...], preferred_element_type=jnp.float32)
    h2 = jnp.maximum(h2 + bf2_ref[...], 0.0)                    # (N, 84)

    out = jnp.dot(h2.astype(jnp.bfloat16), wf3_ref[...], preferred_element_type=jnp.float32)
    o_ref[...] = (out + bf3_ref[...]).astype(o_ref.dtype)       # (N, 10)


# ---------------------------------------------------------------------------
# One-time parameter packing (outside the jitted forward)
# ---------------------------------------------------------------------------

def pack_params(params):
    """Pad / pre-transpose / bf16-cast the weights for the fused kernels."""
    f32, bf16 = jnp.float32, jnp.bfloat16
    return {
        "w1":  jnp.pad(params["conv1_w"].reshape(6, 25), ((0, 0), (0, 7))).astype(bf16),   # (6,32)
        "b1":  params["conv1_b"].reshape(6, 1).astype(f32),
        "w2t": jnp.pad(params["conv2_w"].reshape(16, 150).T, ((0, 10), (0, 0))).astype(bf16),  # (160,16)
        "b2":  params["conv2_b"].reshape(1, 16).astype(f32),
        # fc1 weight rearranged to [s, c, k] so it matches the (s, n)-major conv2 layout
        "w1r": params["fc1_w"].reshape(120, 16, 25).transpose(2, 1, 0).astype(bf16),        # (25,16,120)
        "bf1": params["fc1_b"].reshape(1, 120).astype(f32),
        "wf2": params["fc2_w"].T.astype(bf16),                                              # (120,84)
        "bf2": params["fc2_b"].reshape(1, 84).astype(f32),
        "wf3": params["fc3_w"].T.astype(bf16),                                              # (84,10)
        "bf3": params["fc3_b"].reshape(1, 10).astype(f32),
    }


# ---------------------------------------------------------------------------
# Forward pass (wrapper: patch extraction + 2 pallas_calls)
# ---------------------------------------------------------------------------

def lenet5_forward(x, packed):
    """Matches LeNet_5.forward (eval mode). x: (N, 1, 28, 28) f32 -> (N, 10) f32."""
    n = x.shape[0]
    bf16 = jnp.bfloat16
    dn = ("NCHW", "OIHW", "NCHW")

    # ---- stage 1: conv1(pad=2) + bias + maxpool2x2 + relu (one Pallas kernel) ----
    xp = jnp.pad(x, ((0, 0), (0, 0), (2, 2), (2, 2)))                         # (N,1,32,32)
    pt1 = lax.conv_general_dilated_patches(xp, (5, 5), (1, 1), "VALID",
                                           dimension_numbers=dn)              # (N,25,28,28)
    # regroup the 28x28 conv-output grid into the 4 taps of the 2x2/2 pool:
    # (n,k,ohb,dh,owb,dw) -> (dh,dw,k,n,ohb,owb)
    a1 = pt1.reshape(n, 25, 14, 2, 14, 2).transpose(3, 5, 1, 0, 2, 4)
    a1 = a1.reshape(4, 25, n * 196)
    a1 = jnp.pad(a1, ((0, 0), (0, 7), (0, 0))).astype(bf16)                   # (4,32,N*196)

    p1 = pl.pallas_call(
        _conv1_pool_relu_kernel,
        out_shape=jax.ShapeDtypeStruct((6, n * 196), bf16),
    )(a1, packed["w1"], packed["b1"])                                          # (6, N*196)

    # ---- stage 2: conv2 + bias + maxpool2x2 + relu + fc1/fc2/fc3 (one Pallas kernel)
    p1_nchw = p1.reshape(6, n, 14, 14).transpose(1, 0, 2, 3)                   # (N,6,14,14)
    pt2 = lax.conv_general_dilated_patches(p1_nchw, (5, 5), (1, 1), "VALID",
                                           dimension_numbers=dn)               # (N,150,10,10)
    # (n,f,ohb,dh,owb,dw) -> (dh,dw,ohb,owb,n,f)
    a2 = pt2.reshape(n, 150, 5, 2, 5, 2).transpose(3, 5, 2, 4, 0, 1)
    a2 = a2.reshape(4, 25 * n, 150)
    a2 = jnp.pad(a2, ((0, 0), (0, 0), (0, 10))).astype(bf16)                   # (4,25N,160)

    out = pl.pallas_call(
        _conv2_pool_fc_kernel,
        out_shape=jax.ShapeDtypeStruct((n, 10), jnp.float32),
    )(a2, packed["w2t"], packed["b2"], packed["w1r"], packed["bf1"],
      packed["wf2"], packed["bf2"], packed["wf3"], packed["bf3"])
    return out


# ---------------------------------------------------------------------------
# Reference (pure JAX/XLA) and parameter init
# ---------------------------------------------------------------------------

def lenet5_reference(x, params):
    """Pure-JAX reference implementing LeNet_5.forward (eval mode) in f32."""
    dn = ("NCHW", "OIHW", "NCHW")

    def pool2(y):
        b, c, h, w = y.shape
        return y.reshape(b, c, h // 2, 2, w // 2, 2).max(axis=(3, 5))

    y = lax.conv_general_dilated(x, params["conv1_w"], (1, 1), ((2, 2), (2, 2)),
                                 dimension_numbers=dn) + params["conv1_b"].reshape(1, 6, 1, 1)
    y = jnp.maximum(pool2(y), 0.0)
    y = lax.conv_general_dilated(y, params["conv2_w"], (1, 1), "VALID",
                                 dimension_numbers=dn) + params["conv2_b"].reshape(1, 16, 1, 1)
    y = jnp.maximum(pool2(y), 0.0)
    flat = y.reshape(y.shape[0], -1)
    h1 = jnp.maximum(flat @ params["fc1_w"].T + params["fc1_b"], 0.0)
    h2 = jnp.maximum(h1 @ params["fc2_w"].T + params["fc2_b"], 0.0)
    return h2 @ params["fc3_w"].T + params["fc3_b"]


def init_params(key):
    """Deterministic init, shapes per LeNet_5.__init__ (uniform +-1/sqrt(fan_in))."""
    ks = jax.random.split(key, 10)

    def unif(k, shape, fan_in):
        bound = 1.0 / jnp.sqrt(float(fan_in))
        return jax.random.uniform(k, shape, jnp.float32, -bound, bound)

    return {
        "conv1_w": unif(ks[0], (6, 1, 5, 5), 1 * 5 * 5),
        "conv1_b": unif(ks[1], (6,), 1 * 5 * 5),
        "conv2_w": unif(ks[2], (16, 6, 5, 5), 6 * 5 * 5),
        "conv2_b": unif(ks[3], (16,), 6 * 5 * 5),
        "fc1_w":   unif(ks[4], (120, 400), 400),
        "fc1_b":   unif(ks[5], (120,), 400),
        "fc2_w":   unif(ks[6], (84, 120), 120),
        "fc2_b":   unif(ks[7], (84,), 120),
        "fc3_w":   unif(ks[8], (10, 84), 84),
        "fc3_b":   unif(ks[9], (10,), 84),
    }


if __name__ == "__main__":
    key = jax.random.PRNGKey(0)
    k_x, k_p = jax.random.split(key)
    # LeNet-5's fc1 (16*5*5 inputs) implies 1x28x28 inputs; batch kept small.
    x = jax.random.normal(k_x, (2, 1, 28, 28), dtype=jnp.float32)
    params = init_params(k_p)
    packed = pack_params(params)           # one-time weight packing, outside the jitted fwd

    logits = jax.jit(lenet5_forward)(x, packed)
    jax.block_until_ready(logits)
    assert logits.shape == (2, 10) and logits.dtype == jnp.float32

    # correctness check vs. pure-JAX reference (loose tolerance: bf16 MXU feeds)
    ref = lenet5_reference(x, params)
    err = float(jnp.max(jnp.abs(logits - ref)))
    assert err < 5e-2, f"max |pallas - reference| = {err}"
    print("KERNEL_OK")
</pallas_src>

<mosaic_0001>
module attributes {stable_mosaic.version = 11 : i64} {
  func.func @_conv1_pool_relu_kernel(%arg0: memref<4x32x392xbf16, #tpu.memory_space<vmem>>, %arg1: memref<6x32xbf16, #tpu.memory_space<vmem>>, %arg2: memref<6x1xf32, #tpu.memory_space<vmem>>, %arg3: memref<6x392xbf16, #tpu.memory_space<vmem>>) attributes {dimension_semantics = [], scalar_prefetch = 0 : i64, scratch_operands = 0 : i64, tpu.core_type = #tpu.core_type<tc>} {
    %c0 = arith.constant 0 : index
    %c0_0 = arith.constant 0 : index
    %0 = vector.load %arg1[%c0, %c0_0] : memref<6x32xbf16, #tpu.memory_space<vmem>>, vector<6x32xbf16>
    %c0_1 = arith.constant 0 : index
    %c0_2 = arith.constant 0 : index
    %c0_3 = arith.constant 0 : index
    %1 = vector.load %arg0[%c0_1, %c0_2, %c0_3] : memref<4x32x392xbf16, #tpu.memory_space<vmem>>, vector<1x32x392xbf16>
    %2 = vector.shape_cast %1 : vector<1x32x392xbf16> to vector<32x392xbf16>
    %cst = arith.constant dense<0.000000e+00> : vector<6x392xf32>
    %3 = tpu.matmul %0, %2, %cst {dimension_numbers = #tpu.dot_dimension_numbers<[1], [0], [0], [1], [0, 0, 1, 1], [], []>} : vector<6x32xbf16>, vector<32x392xbf16>, vector<6x392xf32> -> vector<6x392xf32>
    %c1 = arith.constant 1 : index
    %c0_4 = arith.constant 0 : index
    %c0_5 = arith.constant 0 : index
    %4 = vector.load %arg0[%c1, %c0_4, %c0_5] : memref<4x32x392xbf16, #tpu.memory_space<vmem>>, vector<1x32x392xbf16>
    %5 = vector.shape_cast %4 : vector<1x32x392xbf16> to vector<32x392xbf16>
    %cst_6 = arith.constant dense<0.000000e+00> : vector<6x392xf32>
    %6 = tpu.matmul %0, %5, %cst_6 {dimension_numbers = #tpu.dot_dimension_numbers<[1], [0], [0], [1], [0, 0, 1, 1], [], []>} : vector<6x32xbf16>, vector<32x392xbf16>, vector<6x392xf32> -> vector<6x392xf32>
    %7 = arith.maximumf %3, %6 : vector<6x392xf32>
    %c2 = arith.constant 2 : index
    %c0_7 = arith.constant 0 : index
    %c0_8 = arith.constant 0 : index
    %8 = vector.load %arg0[%c2, %c0_7, %c0_8] : memref<4x32x392xbf16, #tpu.memory_space<vmem>>, vector<1x32x392xbf16>
    %9 = vector.shape_cast %8 : vector<1x32x392xbf16> to vector<32x392xbf16>
    %cst_9 = arith.constant dense<0.000000e+00> : vector<6x392xf32>
    %10 = tpu.matmul %0, %9, %cst_9 {dimension_numbers = #tpu.dot_dimension_numbers<[1], [0], [0], [1], [0, 0, 1, 1], [], []>} : vector<6x32xbf16>, vector<32x392xbf16>, vector<6x392xf32> -> vector<6x392xf32>
    %11 = arith.maximumf %7, %10 : vector<6x392xf32>
    %c3 = arith.constant 3 : index
    %c0_10 = arith.constant 0 : index
    %c0_11 = arith.constant 0 : index
    %12 = vector.load %arg0[%c3, %c0_10, %c0_11] : memref<4x32x392xbf16, #tpu.memory_space<vmem>>, vector<1x32x392xbf16>
    %13 = vector.shape_cast %12 : vector<1x32x392xbf16> to vector<32x392xbf16>
    %cst_12 = arith.constant dense<0.000000e+00> : vector<6x392xf32>
    %14 = tpu.matmul %0, %13, %cst_12 {dimension_numbers = #tpu.dot_dimension_numbers<[1], [0], [0], [1], [0, 0, 1, 1], [], []>} : vector<6x32xbf16>, vector<32x392xbf16>, vector<6x392xf32> -> vector<6x392xf32>
    %15 = arith.maximumf %11, %14 : vector<6x392xf32>
    %c0_13 = arith.constant 0 : index
    %c0_14 = arith.constant 0 : index
    %16 = vector.load %arg2[%c0_13, %c0_14] : memref<6x1xf32, #tpu.memory_space<vmem>>, vector<6x1xf32>
    %17 = vector.broadcast %16 : vector<6x1xf32> to vector<6x392xf32>
    %18 = arith.addf %15, %17 : vector<6x392xf32>
    %cst_15 = arith.constant 0.000000e+00 : f32
    %19 = vector.broadcast %cst_15 : f32 to vector<6x392xf32>
    %20 = arith.maximumf %18, %19 : vector<6x392xf32>
    %21 = arith.truncf %20 : vector<6x392xf32> to vector<6x392xbf16>
    %c0_16 = arith.constant 0 : index
    %c0_17 = arith.constant 0 : index
    %22 = vector.load %arg3[%c0_16, %c0_17] : memref<6x392xbf16, #tpu.memory_space<vmem>>, vector<6x392xbf16>
    tpu.vector_store %arg3[%c0_16, %c0_17], %21 {strides = array<i32>} : memref<6x392xbf16, #tpu.memory_space<vmem>>, vector<6x392xbf16>,
    return
  }
}

module attributes {stable_mosaic.version = 11 : i64} {
  func.func @_conv2_pool_fc_kernel(%arg0: memref<4x50x160xbf16, #tpu.memory_space<vmem>>, %arg1: memref<160x16xbf16, #tpu.memory_space<vmem>>, %arg2: memref<1x16xf32, #tpu.memory_space<vmem>>, %arg3: memref<25x16x120xbf16, #tpu.memory_space<vmem>>, %arg4: memref<1x120xf32, #tpu.memory_space<vmem>>, %arg5: memref<120x84xbf16, #tpu.memory_space<vmem>>, %arg6: memref<1x84xf32, #tpu.memory_space<vmem>>, %arg7: memref<84x10xbf16, #tpu.memory_space<vmem>>, %arg8: memref<1x10xf32, #tpu.memory_space<vmem>>, %arg9: memref<2x10xf32, #tpu.memory_space<vmem>>) attributes {dimension_semantics = [], scalar_prefetch = 0 : i64, scratch_operands = 0 : i64, tpu.core_type = #tpu.core_type<tc>} {
    %c0 = arith.constant 0 : index
    %c0_0 = arith.constant 0 : index
    %0 = vector.load %arg1[%c0, %c0_0] : memref<160x16xbf16, #tpu.memory_space<vmem>>, vector<160x16xbf16>
    %c0_1 = arith.constant 0 : index
    %c0_2 = arith.constant 0 : index
    %c0_3 = arith.constant 0 : index
    %1 = vector.load %arg0[%c0_1, %c0_2, %c0_3] : memref<4x50x160xbf16, #tpu.memory_space<vmem>>, vector<1x50x160xbf16>
    %2 = vector.shape_cast %1 : vector<1x50x160xbf16> to vector<50x160xbf16>
    %cst = arith.constant dense<0.000000e+00> : vector<50x16xf32>
    %3 = tpu.matmul %2, %0, %cst {dimension_numbers = #tpu.dot_dimension_numbers<[1], [0], [0], [1], [0, 0, 1, 1], [], []>} : vector<50x160xbf16>, vector<160x16xbf16>, vector<50x16xf32> -> vector<50x16xf32>
    %c1 = arith.constant 1 : index
    %c0_4 = arith.constant 0 : index
    %c0_5 = arith.constant 0 : index
    %4 = vector.load %arg0[%c1, %c0_4, %c0_5] : memref<4x50x160xbf16, #tpu.memory_space<vmem>>, vector<1x50x160xbf16>
    %5 = vector.shape_cast %4 : vector<1x50x160xbf16> to vector<50x160xbf16>
    %cst_6 = arith.constant dense<0.000000e+00> : vector<50x16xf32>
    %6 = tpu.matmul %5, %0, %cst_6 {dimension_numbers = #tpu.dot_dimension_numbers<[1], [0], [0], [1], [0, 0, 1, 1], [], []>} : vector<50x160xbf16>, vector<160x16xbf16>, vector<50x16xf32> -> vector<50x16xf32>
    %7 = arith.maximumf %3, %6 : vector<50x16xf32>
    %c2 = arith.constant 2 : index
    %c0_7 = arith.constant 0 : index
    %c0_8 = arith.constant 0 : index
    %8 = vector.load %arg0[%c2, %c0_7, %c0_8] : memref<4x50x160xbf16, #tpu.memory_space<vmem>>, vector<1x50x160xbf16>
    %9 = vector.shape_cast %8 : vector<1x50x160xbf16> to vector<50x160xbf16>
    %cst_9 = arith.constant dense<0.000000e+00> : vector<50x16xf32>
    %10 = tpu.matmul %9, %0, %cst_9 {dimension_numbers = #tpu.dot_dimension_numbers<[1], [0], [0], [1], [0, 0, 1, 1], [], []>} : vector<50x160xbf16>, vector<160x16xbf16>, vector<50x16xf32> -> vector<50x16xf32>
    %11 = arith.maximumf %7, %10 : vector<50x16xf32>
    %c3 = arith.constant 3 : index
    %c0_10 = arith.constant 0 : index
    %c0_11 = arith.constant 0 : index
    %12 = vector.load %arg0[%c3, %c0_10, %c0_11] : memref<4x50x160xbf16, #tpu.memory_space<vmem>>, vector<1x50x160xbf16>
    %13 = vector.shape_cast %12 : vector<1x50x160xbf16> to vector<50x160xbf16>
    %cst_12 = arith.constant dense<0.000000e+00> : vector<50x16xf32>
    %14 = tpu.matmul %13, %0, %cst_12 {dimension_numbers = #tpu.dot_dimension_numbers<[1], [0], [0], [1], [0, 0, 1, 1], [], []>} : vector<50x160xbf16>, vector<160x16xbf16>, vector<50x16xf32> -> vector<50x16xf32>
    %15 = arith.maximumf %11, %14 : vector<50x16xf32>
    %c0_13 = arith.constant 0 : index
    %c0_14 = arith.constant 0 : index
    %16 = vector.load %arg2[%c0_13, %c0_14] : memref<1x16xf32, #tpu.memory_space<vmem>>, vector<1x16xf32>
    %17 = vector.broadcast %16 : vector<1x16xf32> to vector<50x16xf32>
    %18 = arith.addf %15, %17 : vector<50x16xf32>
    %cst_15 = arith.constant 0.000000e+00 : f32
    %19 = vector.broadcast %cst_15 : f32 to vector<50x16xf32>
    %20 = arith.maximumf %18, %19 : vector<50x16xf32>
    %cst_16 = arith.constant 0.000000e+00 : f32
    %21 = vector.broadcast %cst_16 : f32 to vector<2x120xf32>
    %22 = vector.extract_strided_slice %20 {offsets = [0, 0], sizes = [2, 16], strides = [1, 1]} : vector<50x16xf32> to vector<2x16xf32>
    %23 = arith.truncf %22 : vector<2x16xf32> to vector<2x16xbf16>
    %c0_17 = arith.constant 0 : index
    %c0_18 = arith.constant 0 : index
    %c0_19 = arith.constant 0 : index
    %24 = vector.load %arg3[%c0_17, %c0_18, %c0_19] : memref<25x16x120xbf16, #tpu.memory_space<vmem>>, vector<1x16x120xbf16>
    %25 = vector.shape_cast %24 : vector<1x16x120xbf16> to vector<16x120xbf16>
    %cst_20 = arith.constant dense<0.000000e+00> : vector<2x120xf32>
    %26 = tpu.matmul %23, %25, %cst_20 {dimension_numbers = #tpu.dot_dimension_numbers<[1], [0], [0], [1], [0, 0, 1, 1], [], []>} : vector<2x16xbf16>, vector<16x120xbf16>, vector<2x120xf32> -> vector<2x120xf32>
    %27 = arith.addf %21, %26 : vector<2x120xf32>
    %28 = vector.extract_strided_slice %20 {offsets = [2, 0], sizes = [2, 16], strides = [1, 1]} : vector<50x16xf32> to vector<2x16xf32>
    %29 = arith.truncf %28 : vector<2x16xf32> to vector<2x16xbf16>
    %c1_21 = arith.constant 1 : index
    %c0_22 = arith.constant 0 : index
    %c0_23 = arith.constant 0 : index
    %30 = vector.load %arg3[%c1_21, %c0_22, %c0_23] : memref<25x16x120xbf16, #tpu.memory_space<vmem>>, vector<1x16x120xbf16>
    %31 = vector.shape_cast %30 : vector<1x16x120xbf16> to vector<16x120xbf16>
    %cst_24 = arith.constant dense<0.000000e+00> : vector<2x120xf32>
    %32 = tpu.matmul %29, %31, %cst_24 {dimension_numbers = #tpu.dot_dimension_numbers<[1], [0], [0], [1], [0, 0, 1, 1], [], []>} : vector<2x16xbf16>, vector<16x120xbf16>, vector<2x120xf32> -> vector<2x120xf32>
    %33 = arith.addf %27, %32 : vector<2x120xf32>
    %34 = vector.extract_strided_slice %20 {offsets = [4, 0], sizes = [2, 16], strides = [1, 1]} : vector<50x16xf32> to vector<2x16xf32>
    %35 = arith.truncf %34 : vector<2x16xf32> to vector<2x16xbf16>
    %c2_25 = arith.constant 2 : index
    %c0_26 = arith.constant 0 : index
    %c0_27 = arith.constant 0 : index
    %36 = vector.load %arg3[%c2_25, %c0_26, %c0_27] : memref<25x16x120xbf16, #tpu.memory_space<vmem>>, vector<1x16x120xbf16>
    %37 = vector.shape_cast %36 : vector<1x16x120xbf16> to vector<16x120xbf16>
    %cst_28 = arith.constant dense<0.000000e+00> : vector<2x120xf32>
    %38 = tpu.matmul %35, %37, %cst_28 {dimension_numbers = #tpu.dot_dimension_numbers<[1], [0], [0], [1], [0, 0, 1, 1], [], []>} : vector<2x16xbf16>, vector<16x120xbf16>, vector<2x120xf32> -> vector<2x120xf32>
    %39 = arith.addf %33, %38 : vector<2x120xf32>
    %40 = vector.extract_strided_slice %20 {offsets = [6, 0], sizes = [2, 16], strides = [1, 1]} : vector<50x16xf32> to vector<2x16xf32>
    %41 = arith.truncf %40 : vector<2x16xf32> to vector<2x16xbf16>
    %c3_29 = arith.constant 3 : index
    %c0_30 = arith.constant 0 : index
    %c0_31 = arith.constant 0 : index
    %42 = vector.load %arg3[%c3_29, %c0_30, %c0_31] : memref<25x16x120xbf16, #tpu.memory_space<vmem>>, vector<1x16x120xbf16>
    %43 = vector.shape_cast %42 : vector<1x16x120xbf16> to vector<16x120xbf16>
    %cst_32 = arith.constant dense<0.000000e+00> : vector<2x120xf32>
    %44 = tpu.matmul %41, %43, %cst_32 {dimension_numbers = #tpu.dot_dimension_numbers<[1], [0], [0], [1], [0, 0, 1, 1], [], []>} : vector<2x16xbf16>, vector<16x120xbf16>, vector<2x120xf32> -> vector<2x120xf32>
    %45 = arith.addf %39, %44 : vector<2x120xf32>
    %46 = vector.extract_strided_slice %20 {offsets = [8, 0], sizes = [2, 16], strides = [1, 1]} : vector<50x16xf32> to vector<2x16xf32>
    %47 = arith.truncf %46 : vector<2x16xf32> to vector<2x16xbf16>
    %c4 = arith.constant 4 : index
    %c0_33 = arith.constant 0 : index
    %c0_34 = arith.constant 0 : index
    %48 = vector.load %arg3[%c4, %c0_33, %c0_34] : memref<25x16x120xbf16, #tpu.memory_space<vmem>>, vector<1x16x120xbf16>
    %49 = vector.shape_cast %48 : vector<1x16x120xbf16> to vector<16x120xbf16>
    %cst_35 = arith.constant dense<0.000000e+00> : vector<2x120xf32>
    %50 = tpu.matmul %47, %49, %cst_35 {dimension_numbers = #tpu.dot_dimension_numbers<[1], [0], [0], [1], [0, 0, 1, 1], [], []>} : vector<2x16xbf16>, vector<16x120xbf16>, vector<2x120xf32> -> vector<2x120xf32>
    %51 = arith.addf %45, %50 : vector<2x120xf32>
    %52 = vector.extract_strided_slice %20 {offsets = [10, 0], sizes = [2, 16], strides = [1, 1]} : vector<50x16xf32> to vector<2x16xf32>
    %53 = arith.truncf %52 : vector<2x16xf32> to vector<2x16xbf16>
    %c5 = arith.constant 5 : index
    %c0_36 = arith.constant 0 : index
    %c0_37 = arith.constant 0 : index
    %54 = vector.load %arg3[%c5, %c0_36, %c0_37] : memref<25x16x120xbf16, #tpu.memory_space<vmem>>, vector<1x16x120xbf16>
    %55 = vector.shape_cast %54 : vector<1x16x120xbf16> to vector<16x120xbf16>
    %cst_38 = arith.constant dense<0.000000e+00> : vector<2x120xf32>
    %56 = tpu.matmul %53, %55, %cst_38 {dimension_numbers = #tpu.dot_dimension_numbers<[1], [0], [0], [1], [0, 0, 1, 1], [], []>} : vector<2x16xbf16>, vector<16x120xbf16>, vector<2x120xf32> -> vector<2x120xf32>
    %57 = arith.addf %51, %56 : vector<2x120xf32>
    %58 = vector.extract_strided_slice %20 {offsets = [12, 0], sizes = [2, 16], strides = [1, 1]} : vector<50x16xf32> to vector<2x16xf32>
    %59 = arith.truncf %58 : vector<2x16xf32> to vector<2x16xbf16>
    %c6 = arith.constant 6 : index
    %c0_39 = arith.constant 0 : index
    %c0_40 = arith.constant 0 : index
    %60 = vector.load %arg3[%c6, %c0_39, %c0_40] : memref<25x16x120xbf16, #tpu.memory_space<vmem>>, vector<1x16x120xbf16>
    %61 = vector.shape_cast %60 : vector<1x16x120xbf16> to vector<16x120xbf16>
    %cst_41 = arith.constant dense<0.000000e+00> : vector<2x120xf32>
    %62 = tpu.matmul %59, %61, %cst_41 {dimension_numbers = #tpu.dot_dimension_numbers<[1], [0], [0], [1], [0, 0, 1, 1], [], []>} : vector<2x16xbf16>, vector<16x120xbf16>, vector<2x120xf32> -> vector<2x120xf32>
    %63 = arith.addf %57, %62 : vector<2x120xf32>
    %64 = vector.extract_strided_slice %20 {offsets = [14, 0], sizes = [2, 16], strides = [1, 1]} : vector<50x16xf32> to vector<2x16xf32>
    %65 = arith.truncf %64 : vector<2x16xf32> to vector<2x16xbf16>
    %c7 = arith.constant 7 : index
    %c0_42 = arith.constant 0 : index
    %c0_43 = arith.constant 0 : index
    %66 = vector.load %arg3[%c7, %c0_42, %c0_43] : memref<25x16x120xbf16, #tpu.memory_space<vmem>>, vector<1x16x120xbf16>
    %67 = vector.shape_cast %66 : vector<1x16x120xbf16> to vector<16x120xbf16>
    %cst_44 = arith.constant dense<0.000000e+00> : vector<2x120xf32>
    %68 = tpu.matmul %65, %67, %cst_44 {dimension_numbers = #tpu.dot_dimension_numbers<[1], [0], [0], [1], [0, 0, 1, 1], [], []>} : vector<2x16xbf16>, vector<16x120xbf16>, vector<2x120xf32> -> vector<2x120xf32>
    %69 = arith.addf %63, %68 : vector<2x120xf32>
    %70 = vector.extract_strided_slice %20 {offsets = [16, 0], sizes = [2, 16], strides = [1, 1]} : vector<50x16xf32> to vector<2x16xf32>
    %71 = arith.truncf %70 : vector<2x16xf32> to vector<2x16xbf16>
    %c8 = arith.constant 8 : index
    %c0_45 = arith.constant 0 : index
    %c0_46 = arith.constant 0 : index
    %72 = vector.load %arg3[%c8, %c0_45, %c0_46] : memref<25x16x120xbf16, #tpu.memory_space<vmem>>, vector<1x16x120xbf16>
    %73 = vector.shape_cast %72 : vector<1x16x120xbf16> to vector<16x120xbf16>
    %cst_47 = arith.constant dense<0.000000e+00> : vector<2x120xf32>
    %74 = tpu.matmul %71, %73, %cst_47 {dimension_numbers = #tpu.dot_dimension_numbers<[1], [0], [0], [1], [0, 0, 1, 1], [], []>} : vector<2x16xbf16>, vector<16x120xbf16>, vector<2x120xf32> -> vector<2x120xf32>
    %75 = arith.addf %69, %74 : vector<2x120xf32>
    %76 = vector.extract_strided_slice %20 {offsets = [18, 0], sizes = [2, 16], strides = [1, 1]} : vector<50x16xf32> to vector<2x16xf32>
    %77 = arith.truncf %76 : vector<2x16xf32> to vector<2x16xbf16>
    %c9 = arith.constant 9 : index
    %c0_48 = arith.constant 0 : index
    %c0_49 = arith.constant 0 : index
    %78 = vector.load %arg3[%c9, %c0_48, %c0_49] : memref<25x16x120xbf16, #tpu.memory_space<vmem>>, vector<1x16x120xbf16>
    %79 = vector.shape_cast %78 : vector<1x16x120xbf16> to vector<16x120xbf16>
    %cst_50 = arith.constant dense<0.000000e+00> : vector<2x120xf32>
    %80 = tpu.matmul %77, %79, %cst_50 {dimension_numbers = #tpu.dot_dimension_numbers<[1], [0], [0], [1], [0, 0, 1, 1], [], []>} : vector<2x16xbf16>, vector<16x120xbf16>, vector<2x120xf32> -> vector<2x120xf32>
    %81 = arith.addf %75, %80 : vector<2x120xf32>
    %82 = vector.extract_strided_slice %20 {offsets = [20, 0], sizes = [2, 16], strides = [1, 1]} : vector<50x16xf32> to vector<2x16xf32>
    %83 = arith.truncf %82 : vector<2x16xf32> to vector<2x16xbf16>
    %c10 = arith.constant 10 : index
    %c0_51 = arith.constant 0 : index
    %c0_52 = arith.constant 0 : index
    %84 = vector.load %arg3[%c10, %c0_51, %c0_52] : memref<25x16x120xbf16, #tpu.memory_space<vmem>>, vector<1x16x120xbf16>
    %85 = vector.shape_cast %84 : vector<1x16x120xbf16> to vector<16x120xbf16>
    %cst_53 = arith.constant dense<0.000000e+00> : vector<2x120xf32>
    %86 = tpu.matmul %83, %85, %cst_53 {dimension_numbers = #tpu.dot_dimension_numbers<[1], [0], [0], [1], [0, 0, 1, 1], [], []>} : vector<2x16xbf16>, vector<16x120xbf16>, vector<2x120xf32> -> vector<2x120xf32>
    %87 = arith.addf %81, %86 : vector<2x120xf32>
    %88 = vector.extract_strided_slice %20 {offsets = [22, 0], sizes = [2, 16], strides = [1, 1]} : vector<50x16xf32> to vector<2x16xf32>
    %89 = arith.truncf %88 : vector<2x16xf32> to vector<2x16xbf16>
    %c11 = arith.constant 11 : index
    %c0_54 = arith.constant 0 : index
    %c0_55 = arith.constant 0 : index
    %90 = vector.load %arg3[%c11, %c0_54, %c0_55] : memref<25x16x120xbf16, #tpu.memory_space<vmem>>, vector<1x16x120xbf16>
    %91 = vector.shape_cast %90 : vector<1x16x120xbf16> to vector<16x120xbf16>
    %cst_56 = arith.constant dense<0.000000e+00> : vector<2x120xf32>
    %92 = tpu.matmul %89, %91, %cst_56 {dimension_numbers = #tpu.dot_dimension_numbers<[1], [0], [0], [1], [0, 0, 1, 1], [], []>} : vector<2x16xbf16>, vector<16x120xbf16>, vector<2x120xf32> -> vector<2x120xf32>
    %93 = arith.addf %87, %92 : vector<2x120xf32>
    %94 = vector.extract_strided_slice %20 {offsets = [24, 0], sizes = [2, 16], strides = [1, 1]} : vector<50x16xf32> to vector<2x16xf32>
    %95 = arith.truncf %94 : vector<2x16xf32> to vector<2x16xbf16>
    %c12 = arith.constant 12 : index
    %c0_57 = arith.constant 0 : index
    %c0_58 = arith.constant 0 : index
    %96 = vector.load %arg3[%c12, %c0_57, %c0_58] : memref<25x16x120xbf16, #tpu.memory_space<vmem>>, vector<1x16x120xbf16>
    %97 = vector.shape_cast %96 : vector<1x16x120xbf16> to vector<16x120xbf16>
    %cst_59 = arith.constant dense<0.000000e+00> : vector<2x120xf32>
    %98 = tpu.matmul %95, %97, %cst_59 {dimension_numbers = #tpu.dot_dimension_numbers<[1], [0], [0], [1], [0, 0, 1, 1], [], []>} : vector<2x16xbf16>, vector<16x120xbf16>, vector<2x120xf32> -> vector<2x120xf32>
    %99 = arith.addf %93, %98 : vector<2x120xf32>
    %100 = vector.extract_strided_slice %20 {offsets = [26, 0], sizes = [2, 16], strides = [1, 1]} : vector<50x16xf32> to vector<2x16xf32>
    %101 = arith.truncf %100 : vector<2x16xf32> to vector<2x16xbf16>
    %c13 = arith.constant 13 : index
    %c0_60 = arith.constant 0 : index
    %c0_61 = arith.constant 0 : index
    %102 = vector.load %arg3[%c13, %c0_60, %c0_61] : memref<25x16x120xbf16, #tpu.memory_space<vmem>>, vector<1x16x120xbf16>
    %103 = vector.shape_cast %102 : vector<1x16x120xbf16> to vector<16x120xbf16>
    %cst_62 = arith.constant dense<0.000000e+00> : vector<2x120xf32>
    %104 = tpu.matmul %101, %103, %cst_62 {dimension_numbers = #tpu.dot_dimension_numbers<[1], [0], [0], [1], [0, 0, 1, 1], [], []>} : vector<2x16xbf16>, vector<16x120xbf16>, vector<2x120xf32> -> vector<2x120xf32>
    %105 = arith.addf %99, %104 : vector<2x120xf32>
    %106 = vector.extract_strided_slice %20 {offsets = [28, 0], sizes = [2, 16], strides = [1, 1]} : vector<50x16xf32> to vector<2x16xf32>
    %107 = arith.truncf %106 : vector<2x16xf32> to vector<2x16xbf16>
    %c14 = arith.constant 14 : index
    %c0_63 = arith.constant 0 : index
    %c0_64 = arith.constant 0 : index
    %108 = vector.load %arg3[%c14, %c0_63, %c0_64] : memref<25x16x120xbf16, #tpu.memory_space<vmem>>, vector<1x16x120xbf16>
    %109 = vector.shape_cast %108 : vector<1x16x120xbf16> to vector<16x120xbf16>
    %cst_65 = arith.constant dense<0.000000e+00> : vector<2x120xf32>
    %110 = tpu.matmul %107, %109, %cst_65 {dimension_numbers = #tpu.dot_dimension_numbers<[1], [0], [0], [1], [0, 0, 1, 1], [], []>} : vector<2x16xbf16>, vector<16x120xbf16>, vector<2x120xf32> -> vector<2x120xf32>
    %111 = arith.addf %105, %110 : vector<2x120xf32>
    %112 = vector.extract_strided_slice %20 {offsets = [30, 0], sizes = [2, 16], strides = [1, 1]} : vector<50x16xf32> to vector<2x16xf32>
    %113 = arith.truncf %112 : vector<2x16xf32> to vector<2x16xbf16>
    %c15 = arith.constant 15 : index
    %c0_66 = arith.constant 0 : index
    %c0_67 = arith.constant 0 : index
    %114 = vector.load %arg3[%c15, %c0_66, %c0_67] : memref<25x16x120xbf16, #tpu.memory_space<vmem>>, vector<1x16x120xbf16>
    %115 = vector.shape_cast %114 : vector<1x16x120xbf16> to vector<16x120xbf16>
    %cst_68 = arith.constant dense<0.000000e+00> : vector<2x120xf32>
    %116 = tpu.matmul %113, %115, %cst_68 {dimension_numbers = #tpu.dot_dimension_numbers<[1], [0], [0], [1], [0, 0, 1, 1], [], []>} : vector<2x16xbf16>, vector<16x120xbf16>, vector<2x120xf32> -> vector<2x120xf32>
    %117 = arith.addf %111, %116 : vector<2x120xf32>
    %118 = vector.extract_strided_slice %20 {offsets = [32, 0], sizes = [2, 16], strides = [1, 1]} : vector<50x16xf32> to vector<2x16xf32>
    %119 = arith.truncf %118 : vector<2x16xf32> to vector<2x16xbf16>
    %c16 = arith.constant 16 : index
    %c0_69 = arith.constant 0 : index
    %c0_70 = arith.constant 0 : index
    %120 = vector.load %arg3[%c16, %c0_69, %c0_70] : memref<25x16x120xbf16, #tpu.memory_space<vmem>>, vector<1x16x120xbf16>
    %121 = vector.shape_cast %120 : vector<1x16x120xbf16> to vector<16x120xbf16>
    %cst_71 = arith.constant dense<0.000000e+00> : vector<2x120xf32>
    %122 = tpu.matmul %119, %121, %cst_71 {dimension_numbers = #tpu.dot_dimension_numbers<[1], [0], [0], [1], [0, 0, 1, 1], [], []>} : vector<2x16xbf16>, vector<16x120xbf16>, vector<2x120xf32> -> vector<2x120xf32>
    %123 = arith.addf %117, %122 : vector<2x120xf32>
    %124 = vector.extract_strided_slice %20 {offsets = [34, 0], sizes = [2, 16], strides = [1, 1]} : vector<50x16xf32> to vector<2x16xf32>
    %125 = arith.truncf %124 : vector<2x16xf32> to vector<2x16xbf16>
    %c17 = arith.constant 17 : index
    %c0_72 = arith.constant 0 : index
    %c0_73 = arith.constant 0 : index
    %126 = vector.load %arg3[%c17, %c0_72, %c0_73] : memref<25x16x120xbf16, #tpu.memory_space<vmem>>, vector<1x16x120xbf16>
    %127 = vector.shape_cast %126 : vector<1x16x120xbf16> to vector<16x120xbf16>
    %cst_74 = arith.constant dense<0.000000e+00> : vector<2x120xf32>
    %128 = tpu.matmul %125, %127, %cst_74 {dimension_numbers = #tpu.dot_dimension_numbers<[1], [0], [0], [1], [0, 0, 1, 1], [], []>} : vector<2x16xbf16>, vector<16x120xbf16>, vector<2x120xf32> -> vector<2x120xf32>
    %129 = arith.addf %123, %128 : vector<2x120xf32>
    %130 = vector.extract_strided_slice %20 {offsets = [36, 0], sizes = [2, 16], strides = [1, 1]} : vector<50x16xf32> to vector<2x16xf32>
    %131 = arith.truncf %130 : vector<2x16xf32> to vector<2x16xbf16>
    %c18 = arith.constant 18 : index
    %c0_75 = arith.constant 0 : index
    %c0_76 = arith.constant 0 : index
    %132 = vector.load %arg3[%c18, %c0_75, %c0_76] : memref<25x16x120xbf16, #tpu.memory_space<vmem>>, vector<1x16x120xbf16>
    %133 = vector.shape_cast %132 : vector<1x16x120xbf16> to vector<16x120xbf16>
    %cst_77 = arith.constant dense<0.000000e+00> : vector<2x120xf32>
    %134 = tpu.matmul %131, %133, %cst_77 {dimension_numbers = #tpu.dot_dimension_numbers<[1], [0], [0], [1], [0, 0, 1, 1], [], []>} : vector<2x16xbf16>, vector<16x120xbf16>, vector<2x120xf32> -> vector<2x120xf32>
    %135 = arith.addf %129, %134 : vector<2x120xf32>
    %136 = vector.extract_strided_slice %20 {offsets = [38, 0], sizes = [2, 16], strides = [1, 1]} : vector<50x16xf32> to vector<2x16xf32>
    %137 = arith.truncf %136 : vector<2x16xf32> to vector<2x16xbf16>
    %c19 = arith.constant 19 : index
    %c0_78 = arith.constant 0 : index
    %c0_79 = arith.constant 0 : index
    %138 = vector.load %arg3[%c19, %c0_78, %c0_79] : memref<25x16x120xbf16, #tpu.memory_space<vmem>>, vector<1x16x120xbf16>
    %139 = vector.shape_cast %138 : vector<1x16x120xbf16> to vector<16x120xbf16>
    %cst_80 = arith.constant dense<0.000000e+00> : vector<2x120xf32>
    %140 = tpu.matmul %137, %139, %cst_80 {dimension_numbers = #tpu.dot_dimension_numbers<[1], [0], [0], [1], [0, 0, 1, 1], [], []>} : vector<2x16xbf16>, vector<16x120xbf16>, vector<2x120xf32> -> vector<2x120xf32>
    %141 = arith.addf %135, %140 : vector<2x120xf32>
    %142 = vector.extract_strided_slice %20 {offsets = [40, 0], sizes = [2, 16], strides = [1, 1]} : vector<50x16xf32> to vector<2x16xf32>
    %143 = arith.truncf %142 : vector<2x16xf32> to vector<2x16xbf16>
    %c20 = arith.constant 20 : index
    %c0_81 = arith.constant 0 : index
    %c0_82 = arith.constant 0 : index
    %144 = vector.load %arg3[%c20, %c0_81, %c0_82] : memref<25x16x120xbf16, #tpu.memory_space<vmem>>, vector<1x16x120xbf16>
    %145 = vector.shape_cast %144 : vector<1x16x120xbf16> to vector<16x120xbf16>
    %cst_83 = arith.constant dense<0.000000e+00> : vector<2x120xf32>
    %146 = tpu.matmul %143, %145, %cst_83 {dimension_numbers = #tpu.dot_dimension_numbers<[1], [0], [0], [1], [0, 0, 1, 1], [], []>} : vector<2x16xbf16>, vector<16x120xbf16>, vector<2x120xf32> -> vector<2x120xf32>
    %147 = arith.addf %141, %146 : vector<2x120xf32>
    %148 = vector.extract_strided_slice %20 {offsets = [42, 0], sizes = [2, 16], strides = [1, 1]} : vector<50x16xf32> to vector<2x16xf32>
    %149 = arith.truncf %148 : vector<2x16xf32> to vector<2x16xbf16>
    %c21 = arith.constant 21 : index
    %c0_84 = arith.constant 0 : index
    %c0_85 = arith.constant 0 : index
    %150 = vector.load %arg3[%c21, %c0_84, %c0_85] : memref<25x16x120xbf16, #tpu.memory_space<vmem>>, vector<1x16x120xbf16>
    %151 = vector.shape_cast %150 : vector<1x16x120xbf16> to vector<16x120xbf16>
    %cst_86 = arith.constant dense<0.000000e+00> : vector<2x120xf32>
    %152 = tpu.matmul %149, %151, %cst_86 {dimension_numbers = #tpu.dot_dimension_numbers<[1], [0], [0], [1], [0, 0, 1, 1], [], []>} : vector<2x16xbf16>, vector<16x120xbf16>, vector<2x120xf32> -> vector<2x120xf32>
    %153 = arith.addf %147, %152 : vector<2x120xf32>
    %154 = vector.extract_strided_slice %20 {offsets = [44, 0], sizes = [2, 16], strides = [1, 1]} : vector<50x16xf32> to vector<2x16xf32>
    %155 = arith.truncf %154 : vector<2x16xf32> to vector<2x16xbf16>
    %c22 = arith.constant 22 : index
    %c0_87 = arith.constant 0 : index
    %c0_88 = arith.constant 0 : index
    %156 = vector.load %arg3[%c22, %c0_87, %c0_88] : memref<25x16x120xbf16, #tpu.memory_space<vmem>>, vector<1x16x120xbf16>
    %157 = vector.shape_cast %156 : vector<1x16x120xbf16> to vector<16x120xbf16>
    %cst_89 = arith.constant dense<0.000000e+00> : vector<2x120xf32>
    %158 = tpu.matmul %155, %157, %cst_89 {dimension_numbers = #tpu.dot_dimension_numbers<[1], [0], [0], [1], [0, 0, 1, 1], [], []>} : vector<2x16xbf16>, vector<16x120xbf16>, vector<2x120xf32> -> vector<2x120xf32>
    %159 = arith.addf %153, %158 : vector<2x120xf32>
    %160 = vector.extract_strided_slice %20 {offsets = [46, 0], sizes = [2, 16], strides = [1, 1]} : vector<50x16xf32> to vector<2x16xf32>
    %161 = arith.truncf %160 : vector<2x16xf32> to vector<2x16xbf16>
    %c23 = arith.constant 23 : index
    %c0_90 = arith.constant 0 : index
    %c0_91 = arith.constant 0 : index
    %162 = vector.load %arg3[%c23, %c0_90, %c0_91] : memref<25x16x120xbf16, #tpu.memory_space<vmem>>, vector<1x16x120xbf16>
    %163 = vector.shape_cast %162 : vector<1x16x120xbf16> to vector<16x120xbf16>
    %cst_92 = arith.constant dense<0.000000e+00> : vector<2x120xf32>
    %164 = tpu.matmul %161, %163, %cst_92 {dimension_numbers = #tpu.dot_dimension_numbers<[1], [0], [0], [1], [0, 0, 1, 1], [], []>} : vector<2x16xbf16>, vector<16x120xbf16>, vector<2x120xf32> -> vector<2x120xf32>
    %165 = arith.addf %159, %164 : vector<2x120xf32>
    %166 = vector.extract_strided_slice %20 {offsets = [48, 0], sizes = [2, 16], strides = [1, 1]} : vector<50x16xf32> to vector<2x16xf32>
    %167 = arith.truncf %166 : vector<2x16xf32> to vector<2x16xbf16>
    %c24 = arith.constant 24 : index
    %c0_93 = arith.constant 0 : index
    %c0_94 = arith.constant 0 : index
    %168 = vector.load %arg3[%c24, %c0_93, %c0_94] : memref<25x16x120xbf16, #tpu.memory_space<vmem>>, vector<1x16x120xbf16>
    %169 = vector.shape_cast %168 : vector<1x16x120xbf16> to vector<16x120xbf16>
    %cst_95 = arith.constant dense<0.000000e+00> : vector<2x120xf32>
    %170 = tpu.matmul %167, %169, %cst_95 {dimension_numbers = #tpu.dot_dimension_numbers<[1], [0], [0], [1], [0, 0, 1, 1], [], []>} : vector<2x16xbf16>, vector<16x120xbf16>, vector<2x120xf32> -> vector<2x120xf32>
    %171 = arith.addf %165, %170 : vector<2x120xf32>
    %c0_96 = arith.constant 0 : index
    %c0_97 = arith.constant 0 : index
    %172 = vector.load %arg4[%c0_96, %c0_97] : memref<1x120xf32, #tpu.memory_space<vmem>>, vector<1x120xf32>
    %173 = vector.broadcast %172 : vector<1x120xf32> to vector<2x120xf32>
    %174 = arith.addf %171, %173 : vector<2x120xf32>
    %cst_98 = arith.constant 0.000000e+00 : f32
    %175 = vector.broadcast %cst_98 : f32 to vector<2x120xf32>
    %176 = arith.maximumf %174, %175 : vector<2x120xf32>
    %177 = arith.truncf %176 : vector<2x120xf32> to vector<2x120xbf16>
    %c0_99 = arith.constant 0 : index
    %c0_100 = arith.constant 0 : index
    %178 = vector.load %arg5[%c0_99, %c0_100] : memref<120x84xbf16, #tpu.memory_space<vmem>>, vector<120x84xbf16>
    %cst_101 = arith.constant dense<0.000000e+00> : vector<2x84xf32>
    %179 = tpu.matmul %177, %178, %cst_101 {dimension_numbers = #tpu.dot_dimension_numbers<[1], [0], [0], [1], [0, 0, 1, 1], [], []>} : vector<2x120xbf16>, vector<120x84xbf16>, vector<2x84xf32> -> vector<2x84xf32>
    %c0_102 = arith.constant 0 : index
    %c0_103 = arith.constant 0 : index
    %180 = vector.load %arg6[%c0_102, %c0_103] : memref<1x84xf32, #tpu.memory_space<vmem>>, vector<1x84xf32>
    %181 = vector.broadcast %180 : vector<1x84xf32> to vector<2x84xf32>
    %182 = arith.addf %179, %181 : vector<2x84xf32>
    %cst_104 = arith.constant 0.000000e+00 : f32
    %183 = vector.broadcast %cst_104 : f32 to vector<2x84xf32>
    %184 = arith.maximumf %182, %183 : vector<2x84xf32>
    %185 = arith.truncf %184 : vector<2x84xf32> to vector<2x84xbf16>
    %c0_105 = arith.constant 0 : index
    %c0_106 = arith.constant 0 : index
    %186 = vector.load %arg7[%c0_105, %c0_106] : memref<84x10xbf16, #tpu.memory_space<vmem>>, vector<84x10xbf16>
    %cst_107 = arith.constant dense<0.000000e+00> : vector<2x10xf32>
    %187 = tpu.matmul %185, %186, %cst_107 {dimension_numbers = #tpu.dot_dimension_numbers<[1], [0], [0], [1], [0, 0, 1, 1], [], []>} : vector<2x84xbf16>, vector<84x10xbf16>, vector<2x10xf32> -> vector<2x10xf32>
    %c0_108 = arith.constant 0 : index
    %c0_109 = arith.constant 0 : index
    %188 = vector.load %arg8[%c0_108, %c0_109] : memref<1x10xf32, #tpu.memory_space<vmem>>, vector<1x10xf32>
    %189 = vector.broadcast %188 : vector<1x10xf32> to vector<2x10xf32>
    %190 = arith.addf %187, %189 : vector<2x10xf32>
    %c0_110 = arith.constant 0 : index
    %c0_111 = arith.constant 0 : index
    %191 = vector.load %arg9[%c0_110, %c0_111] : memref<2x10xf32, #tpu.memory_space<vmem>>, vector<2x10xf32>
    tpu.vector_store %arg9[%c0_110, %c0_111], %190 {strides = array<i32>} : memref<2x10xf32, #tpu.memory_space<vmem>>, vector<2x10xf32>,
    return
  }
}

</mosaic_0001>

<bundles_post_ra>
// kernel: lenet5_forward.2
= control target key start
LH: loop header
LB: loop body
LE: loop exit
PB: predicated region body
PF: predicated region fallthrough
CT: control target
= control target key end

     0   :  { %vm64_vm0 = vcmask 261120   ;;  %vm452_vm1 = vcmask 1042432   ;;  %vm453_vm2 = vcmask 63492   ;;  %s921_s0 = inlined_call_operand.vmem [shape: bf16[4,32,392], index: 0, kind: input, shape index: {}]   ;;  %s922_s1 = inlined_call_operand.vmem [shape: bf16[6,32], index: 1, kind: input, shape index: {}]   ;;  %s923_s2 = inlined_call_operand.vmem [shape: f32[6,1], index: 2, kind: input, shape index: {}]   ;;  %s924_s3 = inlined_call_operand.vmem [shape: bf16[6,392], index: 3, kind: output, shape index: {}]  }
   0x1   :  { %v478_v0 = vld [vmem:[%s921_s0 + $0x20] sm:$0xf]  ;;  %v634_v1 = vld [vmem:[%s921_s0 + $0x2c] sm:$0xf0]  ;;  %v632_v2 = vld [vmem:[%s921_s0 + $0x24] sm:$0xf] }
   0x2   :  { %v479_v3 = vor.u32 %v634_v1, %v478_v0  ;;  %v480_v4 = vld [vmem:[%s921_s0 + $0x30] sm:$0xf0]  ;;  %v486_v5 = vld [vmem:[%s921_s0 + $0x28] sm:$0xf]  ;;  %v635_v6 = vld [vmem:[%s921_s0 + $0x34] sm:$0xf0] }
   0x3   :  { %v483_v7 = vor.u32 %v632_v2, %v480_v4  ;;  %v487_v8 = vor.u32 %v635_v6, %v486_v5  ;;  %v633_v9 = vld [vmem:[%s921_s0 + $0x2c] sm:$0xf]  ;;  %v488_v10 = vld [vmem:[%s921_s0 + $0x38] sm:$0xf0]  ;;  %v462_v11 = vld [vmem:[%s921_s0] sm:$0xf] }
   0x4   :  { %74 = vmatpush.bf16.msra.mxu0 %v479_v3  ;;  %v491_v12 = vor.u32 %v633_v9, %v488_v10  ;;  %v630_v13 = vld [vmem:[%s921_s0 + $0xc] sm:$0xf0]  ;;  %v628_v14 = vld [vmem:[%s921_s0 + $0x4] sm:$0xf]  ;;  %v464_v15 = vld [vmem:[%s921_s0 + $0x10] sm:$0xf0] }
   0x5   :  { %87 = vmatpush.bf16.msra.mxu1 %v483_v7  ;;  %100 = vmatpush.bf16.msra.mxu2 %v487_v8  ;;  %v463_v16 = vor.u32 %v630_v13, %v462_v11  ;;  %v467_v17 = vor.u32 %v628_v14, %v464_v15  ;;  %v470_v18 = vld [vmem:[%s921_s0 + $0x8] sm:$0xf]  ;;  %v631_v19 = vld [vmem:[%s921_s0 + $0x14] sm:$0xf0]  ;;  %v629_v20 = vld [vmem:[%s921_s0 + $0xc] sm:$0xf] }
   0x6   :  { %113 = vmatpush.bf16.msra.mxu3 %v491_v12  ;;  %v471_v21 = vor.u32 %v631_v19, %v470_v18  ;;  %v472_v22 = vld [vmem:[%s921_s0 + $0x18] sm:$0xf0]  ;;  %v734_v23 = vld [vmem:[%s922_s1] sm:$0x7]  ;;  %v530_v24 = vld [vmem:[%s921_s0 + $0x68] sm:$0xf] }
   0x7   :  { %v475_v25 = vor.u32 %v629_v20, %v472_v22  ;;  %v643_v26 = vld [vmem:[%s921_s0 + $0x74] sm:$0xf0]  ;;  %v641_v27 = vld [vmem:[%s921_s0 + $0x6c] sm:$0xf]  ;;  %v532_v28 = vld [vmem:[%s921_s0 + $0x78] sm:$0xf0] }
   0x8   :  { %75 = vmatpush.bf16.msra.mxu0 %v463_v16  ;;  %v531_v29 = vor.u32 %v643_v26, %v530_v24  ;;  %v535_v30 = vor.u32 %v641_v27, %v532_v28  ;;  %v522_v31 = vld [vmem:[%s921_s0 + $0x60] sm:$0xf]  ;;  %v642_v32 = vld [vmem:[%s921_s0 + $0x6c] sm:$0xf0]  ;;  %v640_v33 = vld [vmem:[%s921_s0 + $0x64] sm:$0xf] }
   0x9   :  { %88 = vmatpush.bf16.msra.mxu1 %v467_v17  ;;  %101 = vmatpush.bf16.msra.mxu2 %v471_v21  ;;  %v523_v34 = vor.u32 %v642_v32, %v522_v31  ;;  %v524_v35 = vld [vmem:[%s921_s0 + $0x70] sm:$0xf0]  ;;  %v514_v36 = vld [vmem:[%s921_s0 + $0x48] sm:$0xf]  ;;  %v639_v37 = vld [vmem:[%s921_s0 + $0x54] sm:$0xf0] }
   0xa   :  { %114 = vmatpush.bf16.msra.mxu3 %v475_v25  ;;  %v527_v38 = vor.u32 %v640_v33, %v524_v35  ;;  %v515_v39 = vor.u32 %v639_v37, %v514_v36  ;;  %v637_v40 = vld [vmem:[%s921_s0 + $0x4c] sm:$0xf]  ;;  %v516_v41 = vld [vmem:[%s921_s0 + $0x58] sm:$0xf0]  ;;  %v506_v42 = vld [vmem:[%s921_s0 + $0x40] sm:$0xf] }
   0xb   :  { %492 = vmatmul.msk.bf16.vlgmr.msra.gmra.mxu0 %vm64_vm0, %v734_v23  ;;  %v519_v43 = vor.u32 %v637_v40, %v516_v41  ;;  %v638_v44 = vld [vmem:[%s921_s0 + $0x4c] sm:$0xf0]  ;;  %v636_v45 = vld [vmem:[%s921_s0 + $0x44] sm:$0xf]  ;;  %v508_v46 = vld [vmem:[%s921_s0 + $0x50] sm:$0xf0] }
   0xc   :  { %493 = vmatmul.msk.bf16.vlgmr.msra.gmra.mxu1 %vm64_vm0, %v734_v23  ;;  %494 = vmatmul.msk.bf16.vlgmr.msra.gmra.mxu2 %vm64_vm0, %v734_v23  ;;  %v574_v47 = vld [vmem:[%s921_s0 + $0xa8] sm:$0xf]  ;;  %v651_v48 = vld [vmem:[%s921_s0 + $0xb4] sm:$0xf0]  ;;  %v649_v49 = vld [vmem:[%s921_s0 + $0xac] sm:$0xf]  ;;  %v507_v50 = vor.u32 %v638_v44, %v506_v42  ;;  %v511_v55 = vor.u32 %v636_v45, %v508_v46 }
   0xd   :  { %201 = vmatpush.bf16.msrb.mxu2 %v531_v29  ;;  %495 = vmatmul.msk.bf16.vlgmr.msra.gmra.mxu3 %vm64_vm0, %v734_v23  ;;  %v575_v51 = vor.u32 %v651_v48, %v574_v47  ;;  %v576_v52 = vld [vmem:[%s921_s0 + $0xb8] sm:$0xf0]  ;;  %v566_v53 = vld [vmem:[%s921_s0 + $0xa0] sm:$0xf]  ;;  %v650_v54 = vld [vmem:[%s921_s0 + $0xac] sm:$0xf0] }
   0xe   :  { %214 = vmatpush.bf16.msrb.mxu3 %v535_v30  ;;  %175 = vmatpush.bf16.msrb.mxu0 %v523_v34  ;;  %v579_v56 = vor.u32 %v649_v49, %v576_v52  ;;  %v567_v57 = vor.u32 %v650_v54, %v566_v53  ;;  %v648_v58 = vld [vmem:[%s921_s0 + $0xa4] sm:$0xf]  ;;  %v568_v59 = vld [vmem:[%s921_s0 + $0xb0] sm:$0xf0]  ;;  %v558_v60 = vld [vmem:[%s921_s0 + $0x88] sm:$0xf] }
   0xf   :  { %188 = vmatpush.bf16.msrb.mxu1 %v527_v38  ;;  %v571_v61 = vor.u32 %v648_v58, %v568_v59  ;;  %v647_v62 = vld [vmem:[%s921_s0 + $0x94] sm:$0xf0]  ;;  %v645_v63 = vld [vmem:[%s921_s0 + $0x8c] sm:$0xf]  ;;  %v560_v0 = vld [vmem:[%s921_s0 + $0x98] sm:$0xf0] }
  0x10   :  { %v559_v1 = vor.u32 %v647_v62, %v558_v60  ;;  %v563_v2 = vor.u32 %v645_v63, %v560_v0  ;;  %v550_v3 = vld [vmem:[%s921_s0 + $0x80] sm:$0xf]  ;;  %v646_v4 = vld [vmem:[%s921_s0 + $0x8c] sm:$0xf0]  ;;  %v644_v5 = vld [vmem:[%s921_s0 + $0x84] sm:$0xf] }
  0x11   :  { %202 = vmatpush.bf16.msrb.mxu2 %v515_v39  ;;  %v552_v6 = vld [vmem:[%s921_s0 + $0x90] sm:$0xf0]  ;;  %v551_v7 = vor.u32 %v646_v4, %v550_v3  ;;  %v618_v9 = vld [vmem:[%s921_s0 + $0xe8] sm:$0xf]  ;;  %v659_v10 = vld [vmem:[%s921_s0 + $0xf4] sm:$0xf0] }
  0x12   :  { %215 = vmatpush.bf16.msrb.mxu3 %v519_v43  ;;  %176 = vmatpush.bf16.msrb.mxu0 %v507_v50  ;;  %v555_v8 = vor.u32 %v644_v5, %v552_v6  ;;  %v657_v11 = vld [vmem:[%s921_s0 + $0xec] sm:$0xf]  ;;  %v620_v12 = vld [vmem:[%s921_s0 + $0xf8] sm:$0xf0]  ;;  %v610_v13 = vld [vmem:[%s921_s0 + $0xe0] sm:$0xf]  ;;  %v619_v17 = vor.u32 %v659_v10, %v618_v9 }
  0x13   :  { %189 = vmatpush.bf16.msrb.mxu1 %v511_v55  ;;  %v658_v14 = vld [vmem:[%s921_s0 + $0xec] sm:$0xf0]  ;;  %v656_v15 = vld [vmem:[%s921_s0 + $0xe4] sm:$0xf]  ;;  %v612_v16 = vld [vmem:[%s921_s0 + $0xf0] sm:$0xf0]  ;;  %v623_v18 = vor.u32 %v657_v11, %v620_v12 }
  0x14   :  { %v611_v19 = vor.u32 %v658_v14, %v610_v13  ;;  %v602_v20 = vld [vmem:[%s921_s0 + $0xc8] sm:$0xf]  ;;  %v655_v21 = vld [vmem:[%s921_s0 + $0xd4] sm:$0xf0]  ;;  %v653_v22 = vld [vmem:[%s921_s0 + $0xcc] sm:$0xf]  ;;  %v615_v24 = vor.u32 %v656_v15, %v612_v16 }
  0x15   :  { %306 = vmatpush.bf16.msra.mxu2 %v575_v51  ;;  %v604_v25 = vld [vmem:[%s921_s0 + $0xd8] sm:$0xf0]  ;;  %v594_v26 = vld [vmem:[%s921_s0 + $0xc0] sm:$0xf]  ;;  %v654_v27 = vld [vmem:[%s921_s0 + $0xcc] sm:$0xf0]  ;;  %v603_v30 = vor.u32 %v655_v21, %v602_v20 }
  0x16   :  { %319 = vmatpush.bf16.msra.mxu3 %v579_v56  ;;  %280 = vmatpush.bf16.msra.mxu0 %v567_v57  ;;  %v652_v28 = vld [vmem:[%s921_s0 + $0xc4] sm:$0xf]  ;;  %v596_v29 = vld [vmem:[%s921_s0 + $0xd0] sm:$0xf0]  ;;  %v607_v32 = vor.u32 %v653_v22, %v604_v25  ;;  %v595_v33 = vor.u32 %v654_v27, %v594_v26  ;;  %v662_v35 = vmov 0   ;;  %vm454_vm3 = vmor %vm453_vm2, %vm452_vm1 }
  0x17   :  { %293 = vmatpush.bf16.msra.mxu1 %v571_v61  ;;  %v435_v31 = vld [vmem:[%s923_s2] sm:$0x3f]  ;;  %v599_v34 = vor.u32 %v652_v28, %v596_v29  ;;  %661 = vset.pattern.permute.xlu0 %v662_v35 }
  0x18   :  { %438 = vperm.xlu0 %661, %v435_v31  }
  0x19   :  { %307 = vmatpush.bf16.msra.mxu2 %v559_v1 }
  0x1a   :  { %320 = vmatpush.bf16.msra.mxu3 %v563_v2  ;;  %281 = vmatpush.bf16.msra.mxu0 %v551_v7 }
  0x1b   :  { %294 = vmatpush.bf16.msra.mxu1 %v555_v8  ;;  %536 = vmatmul.msk.bf16.vlgmr.msrb.gmra.mxu0 %vm64_vm0, %v734_v23 }
  0x1c   :  { %537 = vmatmul.msk.bf16.vlgmr.msrb.gmra.mxu1 %vm64_vm0, %v734_v23  ;;  %538 = vmatmul.msk.bf16.vlgmr.msrb.gmra.mxu2 %vm64_vm0, %v734_v23 }
  0x1d   :  { %539 = vmatmul.msk.bf16.vlgmr.msrb.gmra.mxu3 %vm64_vm0, %v734_v23  ;;  %411 = vmatpush.bf16.msrb.mxu2 %v619_v17 }
  0x1e   :  { %424 = vmatpush.bf16.msrb.mxu3 %v623_v18  ;;  %385 = vmatpush.bf16.msrb.mxu0 %v611_v19 }
  0x1f   :  { %398 = vmatpush.bf16.msrb.mxu1 %v615_v24 }
  0x21   :  { %412 = vmatpush.bf16.msrb.mxu2 %v603_v30 }
  0x22   :  { %425 = vmatpush.bf16.msrb.mxu3 %v607_v32  ;;  %386 = vmatpush.bf16.msrb.mxu0 %v595_v33 }
  0x23   :  { %399 = vmatpush.bf16.msrb.mxu1 %v599_v34 }
  0x2b   :  { %580 = vmatmul.msk.bf16.vlgmr.msra.gmra.mxu0 %vm64_vm0, %v734_v23 }
  0x2c   :  { %581 = vmatmul.msk.bf16.vlgmr.msra.gmra.mxu1 %vm64_vm0, %v734_v23  ;;  %582 = vmatmul.msk.bf16.vlgmr.msra.gmra.mxu2 %vm64_vm0, %v734_v23 }
  0x2d   :  { %583 = vmatmul.msk.bf16.vlgmr.msra.gmra.mxu3 %vm64_vm0, %v734_v23 }
  0x3b   :  { %624 = vmatmul.msk.bf16.vlgmr.msrb.gmra.mxu0 %vm64_vm0, %v734_v23 }
  0x3c   :  { %625 = vmatmul.msk.bf16.vlgmr.msrb.gmra.mxu1 %vm64_vm0, %v734_v23  ;;  %626 = vmatmul.msk.bf16.vlgmr.msrb.gmra.mxu2 %vm64_vm0, %v734_v23 }
  0x3d   :  { %627 = vmatmul.msk.bf16.vlgmr.msrb.gmra.mxu3 %vm64_vm0, %v734_v23 }
  0x88   :  { %v77_v36 = vpop.f32.mrf.mxu0 }
  0x89   :  { %v90_v37 = vpop.f32.mrf.mxu1 }
  0x8a   :  { %v439_v61 = vpop.permute.xlu0 %438 }
  0x8f   :  { %v103_v38 = vpop.f32.mrf.mxu2 }
  0x90   :  { %v116_v39 = vpop.f32.mrf.mxu3  ;;  %v79_v40 = vpop.f32.mrf.mxu0 }
  0x91   :  { %v92_v41 = vpop.f32.mrf.mxu1 }
  0x97   :  { %v105_v42 = vpop.f32.mrf.mxu2 }
  0x98   :  { %v118_v43 = vpop.f32.mrf.mxu3  ;;  %v178_v44 = vpop.f32.mrf.mxu0 }
  0x99   :  { %v191_v45 = vpop.f32.mrf.mxu1  ;;  %v221_v57 = vmax.f32 %v77_v36, %v178_v44 }
  0x9a   :  { %v222_v58 = vmax.f32 %v90_v37, %v191_v45 }
  0x9f   :  { %v204_v46 = vpop.f32.mrf.mxu2 }
  0xa0   :  { %v217_v47 = vpop.f32.mrf.mxu3  ;;  %v180_v48 = vpop.f32.mrf.mxu0  ;;  %v223_v5 = vmax.f32 %v103_v38, %v204_v46 }
  0xa1   :  { %v193_v49 = vpop.f32.mrf.mxu1  ;;  %v224_v7 = vmax.f32 %v116_v39, %v217_v47 }
  0xa7   :  { %v206_v50 = vpop.f32.mrf.mxu2 }
  0xa8   :  { %v219_v51 = vpop.f32.mrf.mxu3  ;;  %v283_v52 = vpop.f32.mrf.mxu0 }
  0xa9   :  { %v296_v53 = vpop.f32.mrf.mxu1  ;;  %v326_v59 = vmax.f32 %v221_v57, %v283_v52 }
  0xaa   :  { %v327_v62 = vmax.f32 %v222_v58, %v296_v53 }
  0xaf   :  { %v309_v54 = vpop.f32.mrf.mxu2 }
  0xb0   :  { %v322_v23 = vpop.f32.mrf.mxu3  ;;  %v285_v55 = vpop.f32.mrf.mxu0  ;;  %v328_v9 = vmax.f32 %v223_v5, %v309_v54 }
  0xb1   :  { %v298_v56 = vpop.f32.mrf.mxu1  ;;  %v329_v11 = vmax.f32 %v224_v7, %v322_v23 }
  0xb7   :  { %v311_v60 = vpop.f32.mrf.mxu2 }
  0xb8   :  { %v324_v63 = vpop.f32.mrf.mxu3  ;;  %v388_v0 = vpop.f32.mrf.mxu0 }
  0xb9   :  { %v431_v1 = vmax.f32 %v326_v59, %v388_v0  ;;  %v401_v2 = vpop.f32.mrf.mxu1 }
  0xba   :  { %v432_v3 = vmax.f32 %v327_v62, %v401_v2 }
  0xbb   :  { %v441_v4 = vadd.f32 %v439_v61, %v431_v1 }
  0xbc   :  { %v442_v6 = vadd.f32 %v439_v61, %v432_v3 }
  0xbd   :  { %v445_v8 = vmax.f32 %v441_v4, 0.0 }
  0xbe   :  { %v446_v10 = vmax.f32 %v442_v6, 0.0 }
  0xbf   :  { %v414_v12 = vpop.f32.mrf.mxu2 }
  0xc0   :  { %v449_v13 = vpack.c.bf16 %v446_v10, %v445_v8  ;;  %v433_v14 = vmax.f32 %v328_v9, %v414_v12  ;;  %v427_v15 = vpop.f32.mrf.mxu3  ;;  %v390_v16 = vpop.f32.mrf.mxu0 }
  0xc1   :  { %v434_v17 = vmax.f32 %v329_v11, %v427_v15  ;;  %v403_v18 = vpop.f32.mrf.mxu1 }
  0xc2   :  { %451 = vst [vmem:[%s924_s3] sm:$0x77] %v449_v13  ;;  %v443_v19 = vadd.f32 %v439_v61, %v433_v14 }
  0xc3   :  { %v444_v20 = vadd.f32 %v439_v61, %v434_v17 }
  0xc4   :  { %v447_v21 = vmax.f32 %v443_v19, 0.0 }
  0xc5   :  { %v448_v22 = vmax.f32 %v444_v20, 0.0 }
  0xc7   :  { %v450_v24 = vpack.c.bf16 %v448_v22, %v447_v21  ;;  %v416_v25 = vpop.f32.mrf.mxu2 }
  0xc8   :  { %v429_v26 = vpop.f32.mrf.mxu3 }
  0xc9   :  { %455 = vst.msk [vmem:[%s924_s3 + $0x8] sm:$0x77] %vm454_vm3, %v450_v24 }

// kernel: lenet5_forward.3
= control target key start
LH: loop header
LB: loop body
LE: loop exit
PB: predicated region body
PF: predicated region fallthrough
CT: control target
= control target key end

     0   :  { %vm154_vm0 = vcmask 261120   ;;  %s2468_s0 = inlined_call_operand.vmem [shape: bf16[4,50,160], index: 0, kind: input, shape index: {}]   ;;  %s2469_s1 = inlined_call_operand.vmem [shape: bf16[160,16], index: 1, kind: input, shape index: {}]   ;;  %s2470_s2 = inlined_call_operand.vmem [shape: f32[1,16], index: 2, kind: input, shape index: {}]   ;;  %s2471_s3 = inlined_call_operand.vmem [shape: bf16[25,16,120], index: 3, kind: input, shape index: {}]   ;;  %s2472_s4 = inlined_call_operand.vmem [shape: f32[1,120], index: 4, kind: input, shape index: {}]   ;;  %s2473_s5 = inlined_call_operand.vmem [shape: bf16[120,84], index: 5, kind: input, shape index: {}]   ;;  %s2474_s6 = inlined_call_operand.vmem [shape: f32[1,84], index: 6, kind: input, shape index: {}]   ;;  %s2475_s7 = inlined_call_operand.vmem [shape: bf16[84,10], index: 7, kind: input, shape index: {}]   ;;  %s2476_s8 = inlined_call_operand.vmem [shape: f32[1,10], index: 8, kind: input, shape index: {}]   ;;  %s2477_s9 = inlined_call_operand.hbm [shape: f32[2,10], index: 9, kind: output, shape index: {}]  }
   0x1   :  { %v1852_v0 = vld [vmem:[%s2469_s1 + $0x38] sm:$0xff]  ;;  %v1854_v1 = vld [vmem:[%s2469_s1 + $0x48] sm:$0xff]  ;;  %v2007_v2 = vld [vmem:[%s2469_s1 + $0x30] sm:$0xff] }
   0x2   :  { %167 = vmatpush.bf16.msra.mxu0 %v1852_v0  ;;  %276 = vmatpush.bf16.msra.mxu2 %v1852_v0  ;;  %v2012_v3 = vld [vmem:[%s2469_s1 + $0x40] sm:$0xff]  ;;  %v1861_v4 = vld [vmem:[%s2468_s0 + $0x3c] sm:$0xf]  ;;  %v1453_v7 = vld [vmem:[%s2468_s0 + $0x8] sm:$0xf0] }
   0x3   :  { %310 = vmatpush.bf16.msra.mxu3 %v1854_v1  ;;  %201 = vmatpush.bf16.msra.mxu1 %v1854_v1  ;;  %v1528_v5 = vld [vmem:[%s2468_s0 + $0x40] sm:$0xf0]  ;;  %v1850_v9 = vld [vmem:[%s2469_s1 + $0x28] sm:$0xff] }
   0x4   :  { %v1855_v6 = vld [vmem:[%s2468_s0 + $0x4] sm:$0xf]  ;;  %v1531_v8 = vor.u32 %v1861_v4, %v1528_v5 }
   0x5   :  { %v1456_v10 = vor.u32 %v1855_v6, %v1453_v7 }
   0x6   :  { %168 = vmatpush.bf16.msra.mxu0 %v2007_v2  ;;  %277 = vmatpush.bf16.msra.mxu2 %v2007_v2 }
   0x7   :  { %311 = vmatpush.bf16.msra.mxu3 %v2012_v3  ;;  %202 = vmatpush.bf16.msra.mxu1 %v2012_v3 }
   0xb   :  { %426 = vmatpush.bf16.msrb.mxu3 %v1854_v1  ;;  %392 = vmatpush.bf16.msrb.mxu1 %v1852_v0 }
   0xc   :  { %14 = vsyncpa [#allocation3], 0  ;;  %1548 = vmatmul.msk.bf16.vlgmr.msra.gmra.mxu3 %vm154_vm0, %v1531_v8  ;;  %169 = vmatpush.bf16.msra.mxu0 %v1850_v9  ;;  %v1849_v11 = vld [vmem:[%s2469_s1 + $0x20] sm:$0xff]  ;;  %v1848_v12 = vld [vmem:[%s2469_s1 + $0x18] sm:$0xff]  ;;  %vm603_vm1 = vcmask 130048   ;;  %vm1343_vm2 = vcmask 1043456  }
   0xd   :  { %278 = vmatpush.bf16.msra.mxu2 %v1850_v9  ;;  %1513 = vmatmul.msk.bf16.vlgmr.msra.gmra.mxu1 %vm154_vm0, %v1456_v10  ;;  %v1847_v13 = vld [vmem:[%s2469_s1 + $0x10] sm:$0xff]  ;;  %v1863_v14 = vld [vmem:[%s2468_s0 + $0x4c] sm:$0xf]  ;;  %v1461_v17 = vld [vmem:[%s2468_s0 + $0x18] sm:$0xf0]  ;;  %vm1414_vm3 = vcmask 1041408  }
   0xe   :  { %v1536_v15 = vld [vmem:[%s2468_s0 + $0x50] sm:$0xf0]  ;;  %v1846_v19 = vld [vmem:[%s2469_s1 + $0x8] sm:$0xff]  ;;  %v1845_v21 = vld [vmem:[%s2469_s1] sm:$0xff]  ;;  %vm1339_vm4 = vcmask 982016   ;;  %vm1410_vm5 = vcmask 687104  }
   0xf   :  { %393 = vmatpush.bf16.msrb.mxu1 %v2007_v2  ;;  %427 = vmatpush.bf16.msrb.mxu3 %v2012_v3  ;;  %v1857_v16 = vld [vmem:[%s2468_s0 + $0x14] sm:$0xf]  ;;  %v1539_v18 = vor.u32 %v1863_v14, %v1536_v15  ;;  %v1451_v22 = vld [vmem:[%s2468_s0] sm:$0xf]  ;;  %v1856_v23 = vld [vmem:[%s2468_s0 + $0x4] sm:$0xf0] }
  0x10   :  { %170 = vmatpush.bf16.msra.mxu0 %v1849_v11  ;;  %v1464_v20 = vor.u32 %v1857_v16, %v1461_v17  ;;  %v1526_v24 = vld [vmem:[%s2468_s0 + $0x38] sm:$0xf]  ;;  %v1862_v25 = vld [vmem:[%s2468_s0 + $0x3c] sm:$0xf0]  ;;  %v1452_v26 = vor.u32 %v1856_v23, %v1451_v22  ;;  %v1865_v28 = vld [vmem:[%s2468_s0 + $0x5c] sm:$0xf] }
  0x11   :  { %279 = vmatpush.bf16.msra.mxu2 %v1849_v11  ;;  %v1527_v27 = vor.u32 %v1862_v25, %v1526_v24  ;;  %v1544_v29 = vld [vmem:[%s2468_s0 + $0x60] sm:$0xf0]  ;;  %v1469_v31 = vld [vmem:[%s2468_s0 + $0x28] sm:$0xf0]  ;;  %v1459_v34 = vld [vmem:[%s2468_s0 + $0x10] sm:$0xf] }
  0x12   :  { %v1859_v30 = vld [vmem:[%s2468_s0 + $0x24] sm:$0xf]  ;;  %v1547_v32 = vor.u32 %v1865_v28, %v1544_v29  ;;  %v1858_v35 = vld [vmem:[%s2468_s0 + $0x14] sm:$0xf0]  ;;  %v1534_v36 = vld [vmem:[%s2468_s0 + $0x48] sm:$0xf] }
  0x13   :  { %394 = vmatpush.bf16.msrb.mxu1 %v1850_v9  ;;  %v1472_v33 = vor.u32 %v1859_v30, %v1469_v31  ;;  %v1864_v37 = vld [vmem:[%s2468_s0 + $0x4c] sm:$0xf0]  ;;  %v1460_v38 = vor.u32 %v1858_v35, %v1459_v34  ;;  %v1523_v40 = vld [vmem:[%s2468_s0 + $0x68] sm:$0x11]  ;;  %v1467_v46 = vld [vmem:[%s2468_s0 + $0x20] sm:$0xf] }
  0x14   :  { %171 = vmatpush.bf16.msra.mxu0 %v1848_v12  ;;  %v1535_v39 = vor.u32 %v1864_v37, %v1534_v36  ;;  %v60_v41 = vld [vmem:[%s2468_s0 + $0x30] sm:$0x11]  ;;  %v251_v42 = vunpack.c.h.b16 %v1523_v40  ;;  %v1860_v47 = vld [vmem:[%s2468_s0 + $0x24] sm:$0xf0]  ;;  %v1542_v48 = vld [vmem:[%s2468_s0 + $0x58] sm:$0xf]  ;;  %v250_v59 = vunpack.c.l.b16 %v1523_v40 }
  0x15   :  { %280 = vmatpush.bf16.msra.mxu2 %v1848_v12  ;;  %v81_v43 = vunpack.c.h.b16 %v60_v41  ;;  %v1866_v49 = vld [vmem:[%s2468_s0 + $0x5c] sm:$0xf0]  ;;  %v1468_v50 = vor.u32 %v1860_v47, %v1467_v46  ;;  %v1867_v52 = vld [vmem:[%s2468_s0 + $0x74] sm:$0xf]  ;;  %v1563_v53 = vld [vmem:[%s2468_s0 + $0x78] sm:$0xf0]  ;;  %v80_v58 = vunpack.c.l.b16 %v60_v41 }
  0x16   :  { %v259_v44 = vpack.c.b16 %v251_v42, %v251_v42  ;;  %v1543_v51 = vor.u32 %v1866_v49, %v1542_v48  ;;  %v1561_v54 = vld [vmem:[%s2468_s0 + $0x70] sm:$0xf]  ;;  %v1868_v55 = vld [vmem:[%s2468_s0 + $0x74] sm:$0xf0]  ;;  %v1566_v56 = vor.u32 %v1867_v52, %v1563_v53  ;;  %v258_v61 = vpack.c.b16 %v250_v59, %v250_v59  ;;  %v1869_v62 = vld [vmem:[%s2468_s0 + $0x84] sm:$0xf] }
  0x17   :  { %395 = vmatpush.bf16.msrb.mxu1 %v1849_v11  ;;  %v89_v45 = vpack.c.b16 %v81_v43, %v81_v43  ;;  %v1562_v57 = vor.u32 %v1868_v55, %v1561_v54  ;;  %v88_v60 = vpack.c.b16 %v80_v58, %v80_v58  ;;  %v1571_v63 = vld [vmem:[%s2468_s0 + $0x88] sm:$0xf0]  ;;  %v1596_v4 = vld [vmem:[%s2468_s0 + $0xa8] sm:$0xf]  ;;  %v1874_v5 = vld [vmem:[%s2468_s0 + $0xac] sm:$0xf0] }
  0x18   :  { %172 = vmatpush.bf16.msra.mxu0 %v1847_v13  ;;  %v1873_v6 = vld [vmem:[%s2468_s0 + $0xac] sm:$0xf]  ;;  %v1598_v7 = vld [vmem:[%s2468_s0 + $0xb0] sm:$0xf0]  ;;  %v1597_v8 = vor.u32 %v1874_v5, %v1596_v4  ;;  %v1604_v16 = vld [vmem:[%s2468_s0 + $0xb8] sm:$0xf] }
  0x19   :  { %281 = vmatpush.bf16.msra.mxu2 %v1847_v13  ;;  %v1871_v10 = vld [vmem:[%s2468_s0 + $0x94] sm:$0xf]  ;;  %v1876_v17 = vld [vmem:[%s2468_s0 + $0xbc] sm:$0xf0]  ;;  %v1878_v28 = vld [vmem:[%s2468_s0 + $0xcc] sm:$0xf0] }
  0x1a   :  { %v1558_v22 = vld [vmem:[%s2468_s0 + $0xa0] sm:$0x11]  ;;  %v1877_v29 = vld [vmem:[%s2468_s0 + $0xcc] sm:$0xf]  ;;  %v1614_v30 = vld [vmem:[%s2468_s0 + $0xd0] sm:$0xf0] }
  0x1b   :  { %396 = vmatpush.bf16.msrb.mxu1 %v1848_v12  ;;  %v367_v23 = vunpack.c.h.b16 %v1558_v22  ;;  %v366_v24 = vunpack.c.l.b16 %v1558_v22  ;;  %v1880_v41 = vld [vmem:[%s2471_s3 + $0x8] sm:$0xff]  ;;  %s1947_s11 = smov [#allocation2]   ;;  %s1440_s14 = sshll.u32 %s2477_s9, 4  ;;  %vm1431_vm6 = vcmask 74752   ;;  %s1441_s14 = int_to_ptr.hbm [resolvable:$true] %s1440_s14 }
  0x1c   :  { %1549 = vmatmul.msk.bf16.gmra.mxu3 %vm154_vm0, %v1539_v18  ;;  %173 = vmatpush.bf16.msra.mxu0 %v1846_v19  ;;  %v1875_v18 = vld [vmem:[%s2468_s0 + $0xbc] sm:$0xf]  ;;  %s1438_s12 = sshll.u32 %s1947_s11, 4  ;;  %s1439_s12 = int_to_ptr.vmem [resolvable:$true] %s1438_s12 }
  0x1d   :  { %282 = vmatpush.bf16.msra.mxu2 %v1846_v19  ;;  %1514 = vmatmul.msk.bf16.gmra.mxu1 %vm154_vm0, %v1464_v20  ;;  %v1605_v20 = vor.u32 %v1876_v17, %v1604_v16  ;;  %v375_v25 = vpack.c.b16 %v367_v23, %v367_v23 }
  0x1e   :  { %614 = vmatpush.bf16.msra.mxu3 %v1880_v41 }
  0x1f   :  { %397 = vmatpush.bf16.msrb.mxu1 %v1847_v13 }
  0x20   :  { %174 = vmatpush.bf16.msra.mxu0 %v1845_v21 }
  0x21   :  { %283 = vmatpush.bf16.msra.mxu2 %v1845_v21 }
  0x23   :  { %398 = vmatpush.bf16.msrb.mxu1 %v1846_v19  ;;  %175 = vmatmul.bf16.vlgmr.msra.gmra.mxu0 %v1452_v26  ;;  %v374_v26 = vpack.c.b16 %v366_v24, %v366_v24 }
  0x24   :  { %508 = vmatpush.bf16.msrb.mxu0 %v1852_v0  ;;  %284 = vmatmul.bf16.vlgmr.msra.gmra.mxu2 %v1527_v27  ;;  %v1569_v0 = vld [vmem:[%s2468_s0 + $0x80] sm:$0xf]  ;;  %v1612_v27 = vld [vmem:[%s2468_s0 + $0xc8] sm:$0xf] }
  0x25   :  { %542 = vmatpush.bf16.msrb.mxu2 %v1854_v1  ;;  %v1870_v1 = vld [vmem:[%s2468_s0 + $0x84] sm:$0xf0]  ;;  %v1613_v31 = vor.u32 %v1878_v28, %v1612_v27  ;;  %v1879_v27 = vld [vmem:[%s2471_s3] sm:$0xff] }
  0x27   :  { %399 = vmatpush.bf16.msrb.mxu1 %v1845_v21 }
  0x28   :  { %509 = vmatpush.bf16.msrb.mxu0 %v2007_v2  ;;  %v1574_v2 = vor.u32 %v1869_v62, %v1571_v63 }
  0x29   :  { %543 = vmatpush.bf16.msrb.mxu2 %v2012_v3  ;;  %v1570_v3 = vor.u32 %v1870_v1, %v1569_v0  ;;  %v1881_v1 = vld [vmem:[%s2471_s3 + $0x10] sm:$0xff] }
  0x2b   :  { %662 = vmatpush.bf16.msra.mxu1 %v1881_v1 }
  0x2c   :  { %510 = vmatpush.bf16.msrb.mxu0 %v1850_v9  ;;  %1550 = vmatmul.msk.bf16.gmra.mxu3 %vm154_vm0, %v1547_v32  ;;  %v1601_v9 = vor.u32 %v1873_v6, %v1598_v7  ;;  %v1617_v32 = vor.u32 %v1877_v29, %v1614_v30 }
  0x2d   :  { %1515 = vmatmul.msk.bf16.gmra.mxu1 %vm154_vm0, %v1472_v33  ;;  %v1593_v33 = vld [vmem:[%s2468_s0 + $0xd8] sm:$0x11] }
  0x2e   :  { %v482_v35 = vunpack.c.l.b16 %v1593_v33  ;;  %v483_v36 = vunpack.c.h.b16 %v1593_v33 }
  0x30   :  { %511 = vmatpush.bf16.msrb.mxu0 %v1849_v11  ;;  %v1579_v11 = vld [vmem:[%s2468_s0 + $0x98] sm:$0xf0] }
  0x31   :  { %v1582_v14 = vor.u32 %v1871_v10, %v1579_v11 }
  0x33   :  { %180 = vmatmul.bf16.gmra.mxu0 %v1460_v38  ;;  %v490_v38 = vpack.c.b16 %v482_v35, %v482_v35 }
  0x34   :  { %512 = vmatpush.bf16.msrb.mxu0 %v1848_v12  ;;  %289 = vmatmul.bf16.gmra.mxu2 %v1535_v39  ;;  %v1577_v12 = vld [vmem:[%s2468_s0 + $0x90] sm:$0xf]  ;;  %v491_v39 = vpack.c.b16 %v483_v36, %v483_v36  ;;  %v1887_v36 = vld [vmem:[%s2471_s3 + $0x40] sm:$0xff] }
  0x38   :  { %513 = vmatpush.bf16.msrb.mxu0 %v1847_v13  ;;  %v1872_v13 = vld [vmem:[%s2468_s0 + $0x94] sm:$0xf0] }
  0x39   :  { %v1578_v15 = vor.u32 %v1872_v13, %v1577_v12 }
  0x3c   :  { %514 = vmatpush.bf16.msrb.mxu0 %v1846_v19  ;;  %1551 = vmatmul.msk.bf16.gmra.mxu3 %vm154_vm0, %v259_v44  ;;  %v1606_v19 = vld [vmem:[%s2468_s0 + $0xc0] sm:$0xf0] }
  0x3d   :  { %1516 = vmatmul.msk.bf16.gmra.mxu1 %vm154_vm0, %v89_v45 }
  0x40   :  { %515 = vmatpush.bf16.msrb.mxu0 %v1845_v21  ;;  %v1609_v21 = vor.u32 %v1875_v18, %v1606_v19 }
  0x43   :  { %185 = vmatmul.bf16.gmra.mxu0 %v1468_v50 }
  0x44   :  { %294 = vmatmul.bf16.gmra.mxu2 %v1543_v51 }
  0x4c   :  { %1583 = vmatmul.msk.bf16.vlgmr.msrb.gmra.mxu3 %vm154_vm0, %v1566_v56 }
  0x4d   :  { %400 = vmatmul.bf16.vlgmr.msrb.gmra.mxu1 %v1562_v57  ;;  %636 = vmatpush.bf16.msrb.mxu3 %v1879_v27 }
  0x53   :  { %190 = vmatmul.bf16.gmra.mxu0 %v88_v60 }
  0x54   :  { %299 = vmatmul.bf16.gmra.mxu2 %v258_v61 }
  0x5c   :  { %1584 = vmatmul.msk.bf16.gmra.mxu3 %vm154_vm0, %v1574_v2  ;;  %v1883_v2 = vld [vmem:[%s2471_s3 + $0x20] sm:$0xff] }
  0x5d   :  { %405 = vmatmul.bf16.gmra.mxu1 %v1570_v3  ;;  %716 = vmatpush.bf16.msra.mxu0 %v1883_v2 }
  0x63   :  { %516 = vmatmul.bf16.vlgmr.msrb.gmra.mxu0 %v1597_v8  ;;  %v1884_v8 = vld [vmem:[%s2471_s3 + $0x28] sm:$0xff] }
  0x64   :  { %1618 = vmatmul.msk.bf16.vlgmr.msrb.gmra.mxu2 %vm154_vm0, %v1601_v9  ;;  %825 = vmatpush.bf16.msrb.mxu0 %v1887_v36 }
  0x65   :  { %744 = vmatpush.bf16.msra.mxu2 %v1884_v8 }
  0x6c   :  { %1585 = vmatmul.msk.bf16.gmra.mxu3 %vm154_vm0, %v1582_v14 }
  0x6d   :  { %410 = vmatmul.bf16.gmra.mxu1 %v1578_v15 }
  0x73   :  { %521 = vmatmul.bf16.gmra.mxu0 %v1605_v20 }
  0x74   :  { %1619 = vmatmul.msk.bf16.gmra.mxu2 %vm154_vm0, %v1609_v21 }
  0x7c   :  { %1586 = vmatmul.msk.bf16.gmra.mxu3 %vm154_vm0, %v375_v25 }
  0x7d   :  { %415 = vmatmul.bf16.gmra.mxu1 %v374_v26 }
  0x83   :  { %526 = vmatmul.bf16.gmra.mxu0 %v1613_v31 }
  0x84   :  { %1620 = vmatmul.msk.bf16.gmra.mxu2 %vm154_vm0, %v1617_v32  ;;  %v1885_v32 = vld [vmem:[%s2471_s3 + $0x30] sm:$0xff] }
  0x85   :  { %771 = vmatpush.bf16.msrb.mxu1 %v1885_v32  ;;  %v1886_v32 = vld [vmem:[%s2471_s3 + $0x38] sm:$0xff] }
  0x8a   :  { %v204_v34 = vpop.f32.mrf.mxu1 }
  0x8f   :  { %v313_v37 = vpop.f32.mrf.mxu3 }
  0x92   :  { %v2211_v40 = vpop.f32.mrf.mxu1 }
  0x93   :  { %531 = vmatmul.bf16.gmra.mxu0 %v490_v38 }
  0x94   :  { %1621 = vmatmul.msk.bf16.gmra.mxu2 %vm154_vm0, %v491_v39  ;;  %v1888_v39 = vld [vmem:[%s2471_s3 + $0x48] sm:$0xff] }
  0x95   :  { %853 = vmatpush.bf16.msrb.mxu2 %v1888_v39 }
  0x97   :  { %v2217_v42 = vpop.f32.mrf.mxu3 }
  0x9a   :  { %v209_v43 = vpop.f32.mrf.mxu1 }
  0x9f   :  { %v318_v44 = vpop.f32.mrf.mxu3 }
  0xa0   :  { %v176_v45 = vpop.f32.mrf.mxu0 }
  0xa1   :  { %v2219_v46 = vadd.f32 %v204_v34, %v176_v45 }
  0xa2   :  { %v2221_v47 = vpop.f32.mrf.mxu1 }
  0xa7   :  { %v285_v48 = vpop.f32.mrf.mxu2  ;;  %v2223_v49 = vpop.f32.mrf.mxu3 }
  0xa8   :  { %v314_v50 = vadd.f32 %v313_v37, %v285_v48  ;;  %v2225_v51 = vpop.f32.mrf.mxu0 }
  0xaa   :  { %v332_v52 = vmax.f32 %v2219_v46, %v314_v50  ;;  %v214_v53 = vpop.f32.mrf.mxu1 }
  0xaf   :  { %v287_v54 = vpop.f32.mrf.mxu2  ;;  %v323_v55 = vpop.f32.mrf.mxu3 }
  0xb0   :  { %v181_v56 = vpop.f32.mrf.mxu0  ;;  %v316_v46 = vadd.f32 %v2217_v42, %v287_v54  ;;  %v1882_v42 = vld [vmem:[%s2471_s3 + $0x18] sm:$0xff] }
  0xb1   :  { %v2228_v57 = vadd.f32 %v209_v43, %v181_v56 }
  0xb2   :  { %v216_v58 = vpop.f32.mrf.mxu1 }
  0xb7   :  { %v290_v59 = vpop.f32.mrf.mxu2  ;;  %v325_v60 = vpop.f32.mrf.mxu3 }
  0xb8   :  { %v2230_v61 = vadd.f32 %v318_v44, %v290_v59  ;;  %v2232_v62 = vpop.f32.mrf.mxu0  ;;  %v2284_v44 = vld [vmem:[%s2470_s2] ss:$0 sm:$0xff] }
  0xba   :  { %v334_v63 = vmax.f32 %v2228_v57, %v2230_v61  ;;  %v219_v0 = vpop.f32.mrf.mxu1 }
  0xbf   :  { %v2242_v3 = vpop.f32.mrf.mxu2  ;;  %v328_v4 = vpop.f32.mrf.mxu3 }
  0xc0   :  { %v186_v5 = vpop.f32.mrf.mxu0 }
  0xc1   :  { %v2244_v6 = vadd.f32 %v214_v53, %v186_v5  ;;  %v207_v53 = vadd.f32 %v2211_v40, %v2225_v51  ;;  %v1889_v40 = vld [vmem:[%s2471_s3 + $0x50] sm:$0xff] }
  0xc2   :  { %v221_v7 = vpop.f32.mrf.mxu1 }
  0xc7   :  { %v295_v9 = vpop.f32.mrf.mxu2  ;;  %v330_v10 = vpop.f32.mrf.mxu3 }
  0xc8   :  { %v2249_v11 = vadd.f32 %v323_v55, %v295_v9  ;;  %v188_v12 = vpop.f32.mrf.mxu0 }
  0xc9   :  { %v2253_v17 = vadd.f32 %v216_v58, %v188_v12 }
  0xca   :  { %v336_v13 = vmax.f32 %v2244_v6, %v2249_v11  ;;  %v401_v14 = vpop.f32.mrf.mxu1 }
  0xcf   :  { %v297_v15 = vpop.f32.mrf.mxu2  ;;  %v429_v16 = vpop.f32.mrf.mxu3 }
  0xd0   :  { %v2255_v18 = vadd.f32 %v325_v60, %v297_v15  ;;  %v191_v19 = vpop.f32.mrf.mxu0  ;;  %v430_v35 = vadd.f32 %v429_v16, %v401_v14  ;;  %v1891_v15 = vld [vmem:[%s2471_s3 + $0x60] sm:$0xff] }
  0xd1   :  { %v2257_v20 = vadd.f32 %v219_v0, %v191_v19 }
  0xd2   :  { %v337_v21 = vmax.f32 %v2253_v17, %v2255_v18  ;;  %v403_v22 = vpop.f32.mrf.mxu1  ;;  %v448_v41 = vmax.f32 %v332_v52, %v430_v35  ;;  %v333_v52 = vmax.f32 %v207_v53, %v316_v46  ;;  %v321_v35 = vadd.f32 %v2223_v49, %v2242_v3 }
  0xd7   :  { %v300_v23 = vpop.f32.mrf.mxu2  ;;  %v431_v24 = vpop.f32.mrf.mxu3 }
  0xd8   :  { %v2261_v25 = vadd.f32 %v328_v4, %v300_v23  ;;  %v193_v26 = vpop.f32.mrf.mxu0  ;;  %v432_v55 = vadd.f32 %v431_v24, %v403_v22  ;;  %v1892_v24 = vld [vmem:[%s2471_s3 + $0x68] sm:$0xff] }
  0xda   :  { %v338_v28 = vmax.f32 %v2257_v20, %v2261_v25  ;;  %v406_v29 = vpop.f32.mrf.mxu1  ;;  %v449_v0 = vmax.f32 %v333_v52, %v432_v55 }
  0xdf   :  { %v302_v30 = vpop.f32.mrf.mxu2  ;;  %v434_v31 = vpop.f32.mrf.mxu3 }
  0xe0   :  { %v517_v33 = vpop.f32.mrf.mxu0  ;;  %v435_v8 = vadd.f32 %v434_v31, %v406_v29 }
  0xe2   :  { %v2271_v34 = vpop.f32.mrf.mxu1  ;;  %v450_v16 = vmax.f32 %v334_v63, %v435_v8  ;;  %v1900_v8 = vld [vmem:[%s2471_s3 + $0xa8] sm:$0xff] }
  0xe7   :  { %v2276_v37 = vpop.f32.mrf.mxu3  ;;  %v545_v38 = vpop.f32.mrf.mxu2 }
  0xe8   :  { %v546_v43 = vadd.f32 %v545_v38, %v517_v33  ;;  %v519_v45 = vpop.f32.mrf.mxu0  ;;  %v1893_v33 = vld [vmem:[%s2471_s3 + $0x70] sm:$0xff] }
  0xea   :  { %v564_v48 = vmax.f32 %v448_v41, %v546_v43  ;;  %v2287_v50 = vpop.f32.mrf.mxu1  ;;  %v212_v43 = vadd.f32 %v2221_v47, %v2232_v62 }
  0xec   :  { %v575_v56 = vadd.f32 %v2284_v44, %v564_v48  ;;  %v335_v49 = vmax.f32 %v212_v43, %v321_v35 }
  0xee   :  { %v582_v58 = vmax.f32 %v575_v56, 0.0 }
  0xef   :  { %v2292_v59 = vpop.f32.mrf.mxu3  ;;  %v547_v60 = vpop.f32.mrf.mxu2 }
  0xf0   :  { %v2294_v1 = vpack.c.bf16 %v582_v58, %v582_v58  ;;  %v548_v2 = vadd.f32 %v547_v60, %v519_v45  ;;  %v522_v4 = vpop.f32.mrf.mxu0  ;;  %v437_v45 = vadd.f32 %v2276_v37, %v2271_v34  ;;  %v1896_v34 = vld [vmem:[%s2471_s3 + $0x88] sm:$0xff]  ;;  %v440_v17 = vadd.f32 %v2292_v59, %v2287_v50 }
  0xf2   :  { %v565_v51 = vmax.f32 %v449_v0, %v548_v2  ;;  %v596_v54 = vrot.slane %v2294_v1, 1  ;;  %v645_v5 = vrot.slane %v2294_v1, 2  ;;  %v413_v7 = vpop.f32.mrf.mxu1  ;;  %v451_v62 = vmax.f32 %v335_v49, %v437_v45  ;;  %v1890_v0 = vld [vmem:[%s2471_s3 + $0x58] sm:$0xff]  ;;  %v1897_v2 = vld [vmem:[%s2471_s3 + $0x90] sm:$0xff] }
  0xf4   :  { %v576_v9 = vadd.f32 %v2284_v44, %v565_v51  ;;  %1628 = vmatmul.msk.bf16.vlgmr.msra.gmra.mxu3 %vm603_vm1, %v596_v54  ;;  %1640 = vmatmul.msk.bf16.vlgmr.msra.gmra.mxu1 %vm603_vm1, %v645_v5 }
  0xf5   :  { %689 = vmatpush.bf16.msra.mxu3 %v1882_v42  ;;  %880 = vmatpush.bf16.msra.mxu1 %v1889_v40  ;;  %v672_v40 = vrot.slane %v2294_v1, 3 }
  0xf6   :  { %v583_v10 = vmax.f32 %v576_v9, 0.0 }
  0xf7   :  { %v441_v12 = vpop.f32.mrf.mxu3  ;;  %v550_v14 = vpop.f32.mrf.mxu2 }
  0xf8   :  { %v2313_v19 = vpack.c.bf16 %v583_v10, %v583_v10  ;;  %v551_v22 = vadd.f32 %v550_v14, %v522_v4  ;;  %v524_v23 = vpop.f32.mrf.mxu0  ;;  %v442_v53 = vadd.f32 %v441_v12, %v413_v7  ;;  %v452_v7 = vmax.f32 %v336_v13, %v440_v17  ;;  %v1894_v13 = vld [vmem:[%s2471_s3 + $0x78] sm:$0xff] }
  0xfa   :  { %v566_v26 = vmax.f32 %v450_v16, %v551_v22  ;;  %1654 = vmatmul.msk.bf16.vlgmr.msra.gmra.mxu0 %vm603_vm1, %v2313_v19  ;;  %v727_v27 = vrot.slane %v2313_v19, 1  ;;  %v416_v29 = vpop.f32.mrf.mxu1  ;;  %v754_v39 = vrot.slane %v2313_v19, 2  ;;  %v453_v52 = vmax.f32 %v337_v21, %v442_v53 }
  0xfb   :  { %934 = vmatpush.bf16.msra.mxu0 %v1891_v15  ;;  %v1901_v15 = vld [vmem:[%s2471_s3 + $0xb0] sm:$0xff]  ;;  %v781_v22 = vrot.slane %v2313_v19, 3  ;;  %v1898_v19 = vld [vmem:[%s2471_s3 + $0x98] sm:$0xff] }
  0xfc   :  { %1661 = vmatmul.msk.bf16.vlgmr.msra.gmra.mxu2 %vm603_vm1, %v727_v27  ;;  %v577_v57 = vadd.f32 %v2284_v44, %v566_v26 }
  0xfd   :  { %962 = vmatpush.bf16.msra.mxu2 %v1892_v24  ;;  %v1903_v24 = vld [vmem:[%s2471_s3 + $0xc0] sm:$0xff] }
  0xfe   :  { %v584_v36 = vmax.f32 %v577_v57, 0.0 }
  0xff   :  { %v444_v61 = vpop.f32.mrf.mxu3  ;;  %v552_v63 = vpop.f32.mrf.mxu2 }
 0x100   :  { %v445_v30 = vadd.f32 %v444_v61, %v416_v29  ;;  %v527_v31 = vpop.f32.mrf.mxu0  ;;  %v2342_v3 = vpack.c.bf16 %v584_v36, %v584_v36  ;;  %v553_v20 = vadd.f32 %v552_v63, %v524_v23 }
 0x102   :  { %v454_v38 = vmax.f32 %v338_v28, %v445_v30  ;;  %v418_v41 = vpop.f32.mrf.mxu1  ;;  %v1895_v28 = vld [vmem:[%s2471_s3 + $0x80] sm:$0xff]  ;;  %v567_v37 = vmax.f32 %v451_v62, %v553_v20  ;;  %v836_v48 = vrot.slane %v2342_v3, 1  ;;  %v863_v51 = vrot.slane %v2342_v3, 2  ;;  %v1902_v30 = vld [vmem:[%s2471_s3 + $0xb8] sm:$0xff] }
 0x103   :  { %v890_v27 = vrot.slane %v2342_v3, 3 }
 0x104   :  { %1633 = vmatmul.msk.bf16.vlgmr.msrb.gmra.mxu3 %vm603_vm1, %v2294_v1  ;;  %1668 = vmatmul.msk.bf16.vlgmr.msrb.gmra.mxu1 %vm603_vm1, %v754_v39  ;;  %v578_v55 = vadd.f32 %v2284_v44, %v567_v37  ;;  %v1899_v1 = vld [vmem:[%s2471_s3 + $0xa0] sm:$0xff] }
 0x105   :  { %798 = vmatpush.bf16.msrb.mxu3 %v1886_v32  ;;  %989 = vmatpush.bf16.msrb.mxu1 %v1893_v33 }
 0x106   :  { %v585_v4 = vmax.f32 %v578_v55, 0.0 }
 0x107   :  { %v555_v25 = vpop.f32.mrf.mxu2  ;;  %v446_v47 = vpop.f32.mrf.mxu3 }
 0x108   :  { %v529_v46 = vpop.f32.mrf.mxu0  ;;  %v914_v21 = vpack.c.bf16 %v585_v4, %v585_v4  ;;  %v556_v54 = vadd.f32 %v555_v25, %v527_v31 }
 0x10a   :  { %1682 = vmatmul.msk.bf16.vlgmr.msrb.gmra.mxu0 %vm603_vm1, %v2342_v3  ;;  %v568_v9 = vmax.f32 %v452_v7, %v556_v54  ;;  %v945_v12 = vrot.slane %v914_v21, 1  ;;  %v972_v23 = vrot.slane %v914_v21, 2  ;;  %v999_v31 = vrot.slane %v914_v21, 3 }
 0x10b   :  { %1043 = vmatpush.bf16.msrb.mxu0 %v1895_v28 }
 0x10c   :  { %1689 = vmatmul.msk.bf16.vlgmr.msrb.gmra.mxu2 %vm603_vm1, %v836_v48  ;;  %v579_v6 = vadd.f32 %v2284_v44, %v568_v9 }
 0x10d   :  { %1071 = vmatpush.bf16.msrb.mxu2 %v1896_v34 }
 0x10e   :  { %v586_v16 = vmax.f32 %v579_v6, 0.0 }
 0x10f   :  { %v557_v56 = vpop.f32.mrf.mxu2 }
 0x110   :  { %v558_v58 = vadd.f32 %v557_v56, %v529_v46  ;;  %v532_v60 = vpop.f32.mrf.mxu0 }
 0x112   :  { %v569_v42 = vmax.f32 %v453_v52, %v558_v58 }
 0x114   :  { %v580_v18 = vadd.f32 %v2284_v44, %v569_v42  ;;  %1647 = vmatmul.msk.bf16.vlgmr.msra.gmra.mxu3 %vm603_vm1, %v672_v40  ;;  %1696 = vmatmul.msk.bf16.vlgmr.msra.gmra.mxu1 %vm603_vm1, %v863_v51 }
 0x115   :  { %907 = vmatpush.bf16.msra.mxu3 %v1890_v0  ;;  %1098 = vmatpush.bf16.msra.mxu1 %v1897_v2 }
 0x116   :  { %v587_v57 = vmax.f32 %v580_v18, 0.0 }
 0x117   :  { %v560_v5 = vpop.f32.mrf.mxu2 }
 0x118   :  { %v561_v50 = vadd.f32 %v560_v5, %v532_v60  ;;  %v534_v59 = vpop.f32.mrf.mxu0  ;;  %v1132_v61 = vpack.c.bf16 %v587_v57, %v587_v57 }
 0x11a   :  { %v570_v10 = vmax.f32 %v454_v38, %v561_v50  ;;  %1710 = vmatmul.msk.bf16.vlgmr.msra.gmra.mxu0 %vm603_vm1, %v914_v21  ;;  %v1163_v63 = vrot.slane %v1132_v61, 1  ;;  %v1190_v32 = vrot.slane %v1132_v61, 2  ;;  %v1217_v38 = vrot.slane %v1132_v61, 3 }
 0x11b   :  { %1152 = vmatpush.bf16.msra.mxu0 %v1899_v1 }
 0x11c   :  { %v581_v14 = vadd.f32 %v2284_v44, %v570_v10  ;;  %1717 = vmatmul.msk.bf16.vlgmr.msra.gmra.mxu2 %vm603_vm1, %v945_v12  ;;  %v1023_v44 = vpack.c.bf16 %v586_v16, %v586_v16 }
 0x11d   :  { %1180 = vmatpush.bf16.msra.mxu2 %v1900_v8  ;;  %v1289_v8 = vld [vmem:[%s2473_s5 + $0x38] sm:$0xf] }
 0x11e   :  { %v1054_v26 = vrot.slane %v1023_v44, 1  ;;  %v1081_v29 = vrot.slane %v1023_v44, 2  ;;  %v588_v33 = vmax.f32 %v581_v14, 0.0  ;;  %v1108_v36 = vrot.slane %v1023_v44, 3 }
 0x11f   :  { %v562_v11 = vpop.f32.mrf.mxu2  ;;  %v1323_v12 = vunpack.c.l.b16 %v1289_v8 }
 0x120   :  { %v1241_v35 = vpack.c.bf16 %v588_v33, %v588_v33 }
 0x121   :  { %v1331_v11 = vpack.c.b16 %v1323_v12, %v1323_v12 }
 0x124   :  { %1675 = vmatmul.msk.bf16.vlgmr.msrb.gmra.mxu3 %vm603_vm1, %v781_v22  ;;  %1724 = vmatmul.msk.bf16.vlgmr.msrb.gmra.mxu1 %vm603_vm1, %v972_v23 }
 0x125   :  { %1016 = vmatpush.bf16.msrb.mxu3 %v1894_v13  ;;  %1207 = vmatpush.bf16.msrb.mxu1 %v1901_v15  ;;  %v1345_v13 = vsel %vm1343_vm2, %v1331_v11, 0  ;;  %v1910_v15 = vld [vmem:[%s2473_s5 + $0x30] sm:$0xff] }
 0x12a   :  { %1738 = vmatmul.msk.bf16.vlgmr.msrb.gmra.mxu0 %vm603_vm1, %v1023_v44 }
 0x12b   :  { %1261 = vmatpush.bf16.msrb.mxu0 %v1903_v24 }
 0x12c   :  { %1745 = vmatmul.msk.bf16.vlgmr.msrb.gmra.mxu2 %vm603_vm1, %v1054_v26  ;;  %v1909_v26 = vld [vmem:[%s2473_s5 + $0x28] sm:$0xff] }
 0x12d   :  { %1347 = vmatpush.bf16.msrb.mxu2 %v1345_v13 }
 0x131   :  { %1348 = vmatpush.bf16.msrb.mxu2 %v1910_v15 }
 0x134   :  { %1703 = vmatmul.msk.bf16.vlgmr.msra.gmra.mxu3 %vm603_vm1, %v890_v27  ;;  %1752 = vmatmul.msk.bf16.vlgmr.msra.gmra.mxu1 %vm603_vm1, %v1081_v29  ;;  %v1908_v29 = vld [vmem:[%s2473_s5 + $0x20] sm:$0xff] }
 0x135   :  { %1125 = vmatpush.bf16.msra.mxu3 %v1898_v19  ;;  %1349 = vmatpush.bf16.msrb.mxu2 %v1909_v26 }
 0x139   :  { %1350 = vmatpush.bf16.msrb.mxu2 %v1908_v29 }
 0x13a   :  { %1766 = vmatmul.msk.bf16.vlgmr.msra.gmra.mxu0 %vm603_vm1, %v1132_v61 }
 0x13c   :  { %1773 = vmatmul.msk.bf16.vlgmr.msra.gmra.mxu2 %vm603_vm1, %v1163_v63 }
 0x144   :  { %1731 = vmatmul.msk.bf16.vlgmr.msrb.gmra.mxu3 %vm603_vm1, %v999_v31  ;;  %1780 = vmatmul.msk.bf16.vlgmr.msrb.gmra.mxu1 %vm603_vm1, %v1190_v32 }
 0x145   :  { %1234 = vmatpush.bf16.msrb.mxu3 %v1902_v30  ;;  %v1907_v30 = vld [vmem:[%s2473_s5 + $0x18] sm:$0xff] }
 0x146   :  { %1351 = vmatpush.bf16.msrb.mxu2 %v1907_v30 }
 0x14a   :  { %1794 = vmatmul.msk.bf16.vlgmr.msrb.gmra.mxu0 %vm603_vm1, %v1241_v35  ;;  %v1906_v35 = vld [vmem:[%s2473_s5 + $0x10] sm:$0xff] }
 0x14b   :  { %1352 = vmatpush.bf16.msrb.mxu2 %v1906_v35 }
 0x154   :  { %1759 = vmatmul.msk.bf16.vlgmr.msra.gmra.mxu3 %vm603_vm1, %v1108_v36 }
 0x164   :  { %1787 = vmatmul.msk.bf16.vlgmr.msrb.gmra.mxu3 %vm603_vm1, %v1217_v38 }
 0x171   :  { %v664_v39 = vpop.f32.mrf.mxu1 }
 0x177   :  { %v616_v41 = vpop.f32.mrf.mxu3  ;;  %v718_v43 = vpop.f32.mrf.mxu0 }
 0x179   :  { %v666_v45 = vpop.f32.mrf.mxu1 }
 0x17a   :  { %v1905_v45 = vld [vmem:[%s2473_s5 + $0x8] sm:$0xff] }
 0x17b   :  { %1353 = vmatpush.bf16.msrb.mxu2 %v1905_v45 }
 0x17f   :  { %v618_v49 = vpop.f32.mrf.mxu3  ;;  %v720_v3 = vpop.f32.mrf.mxu0 }
 0x180   :  { %v746_v20 = vpop.f32.mrf.mxu2  ;;  %v1904_v3 = vld [vmem:[%s2473_s5] sm:$0xff] }
 0x181   :  { %v773_v25 = vpop.f32.mrf.mxu1  ;;  %1354 = vmatpush.bf16.msrb.mxu2 %v1904_v3 }
 0x187   :  { %v638_v28 = vpop.f32.mrf.mxu3  ;;  %v827_v47 = vpop.f32.mrf.mxu0 }
 0x188   :  { %v639_v62 = vadd.f32 %v638_v28, %v616_v41  ;;  %v748_v46 = vpop.f32.mrf.mxu2 }
 0x189   :  { %v775_v34 = vpop.f32.mrf.mxu1 }
 0x18a   :  { %v668_v37 = vadd.f32 %v664_v39, %v639_v62 }
 0x18f   :  { %v640_v48 = vpop.f32.mrf.mxu3  ;;  %v829_v53 = vpop.f32.mrf.mxu0 }
 0x190   :  { %v855_v55 = vpop.f32.mrf.mxu2 }
 0x191   :  { %v882_v56 = vpop.f32.mrf.mxu1 }
 0x197   :  { %v691_v52 = vpop.f32.mrf.mxu3  ;;  %v936_v58 = vpop.f32.mrf.mxu0 }
 0x198   :  { %v695_v60 = vadd.f32 %v691_v52, %v668_v37  ;;  %v857_v0 = vpop.f32.mrf.mxu2  ;;  %v1914_v52 = vld [vmem:[%s2475_s7 + $0x18] sm:$0xff] }
 0x199   :  { %v884_v2 = vpop.f32.mrf.mxu1  ;;  %v1913_v0 = vld [vmem:[%s2475_s7 + $0x10] sm:$0xff] }
 0x19a   :  { %v722_v4 = vadd.f32 %v718_v43, %v695_v60 }
 0x19c   :  { %v750_v42 = vadd.f32 %v746_v20, %v722_v4 }
 0x19e   :  { %v777_v40 = vadd.f32 %v773_v25, %v750_v42 }
 0x19f   :  { %v693_v51 = vpop.f32.mrf.mxu3  ;;  %v938_v17 = vpop.f32.mrf.mxu0 }
 0x1a0   :  { %v964_v18 = vpop.f32.mrf.mxu2  ;;  %v1918_v51 = vld [vmem:[%s2472_s4] ss:$0 sm:$0xff] }
 0x1a1   :  { %v991_v21 = vpop.f32.mrf.mxu1 }
 0x1a7   :  { %v800_v54 = vpop.f32.mrf.mxu3  ;;  %v1045_v5 = vpop.f32.mrf.mxu0 }
 0x1a8   :  { %v804_v1 = vadd.f32 %v800_v54, %v777_v40  ;;  %v966_v7 = vpop.f32.mrf.mxu2 }
 0x1a9   :  { %v993_v50 = vpop.f32.mrf.mxu1  ;;  %v1911_v7 = vld [vmem:[%s2475_s7] sm:$0xff] }
 0x1aa   :  { %v831_v59 = vadd.f32 %v827_v47, %v804_v1  ;;  %v1372_v47 = vld [vmem:[%s2475_s7 + $0x28] sm:$0x3]  ;;  %v1919_v50 = vld [vmem:[%s2474_s6] ss:$0 sm:$0xff] }
 0x1ab   :  { %v1398_v62 = vunpack.c.l.b16 %v1372_v47  ;;  %v1912_v1 = vld [vmem:[%s2475_s7 + $0x8] sm:$0xff] }
 0x1ac   :  { %v859_v23 = vadd.f32 %v855_v55, %v831_v59  ;;  %v1915_v55 = vld [vmem:[%s2475_s7 + $0x20] sm:$0xff] }
 0x1ad   :  { %v1404_v34 = vpack.c.b16 %v1398_v62, %v1398_v62 }
 0x1ae   :  { %v886_v19 = vadd.f32 %v882_v56, %v859_v23 }
 0x1af   :  { %v802_v9 = vpop.f32.mrf.mxu3  ;;  %v1047_v10 = vpop.f32.mrf.mxu0  ;;  %v1416_v48 = vsel %vm1414_vm3, %v1404_v34, 0 }
 0x1b0   :  { %v1073_v14 = vpop.f32.mrf.mxu2  ;;  %1420 = vmatpush.bf16.msra.mxu1 %v1416_v48 }
 0x1b1   :  { %v1100_v6 = vpop.f32.mrf.mxu1 }
 0x1b4   :  { %1421 = vmatpush.bf16.msra.mxu1 %v1915_v55 }
 0x1b7   :  { %v909_v16 = vpop.f32.mrf.mxu3  ;;  %v1154_v22 = vpop.f32.mrf.mxu0 }
 0x1b8   :  { %v1075_v44 = vpop.f32.mrf.mxu2  ;;  %v913_v27 = vadd.f32 %v909_v16, %v886_v19  ;;  %1422 = vmatpush.bf16.msra.mxu1 %v1914_v52 }
 0x1b9   :  { %v1102_v24 = vpop.f32.mrf.mxu1 }
 0x1ba   :  { %v940_v32 = vadd.f32 %v936_v58, %v913_v27 }
 0x1bc   :  { %v968_v33 = vadd.f32 %v964_v18, %v940_v32  ;;  %1423 = vmatpush.bf16.msra.mxu1 %v1913_v0 }
 0x1be   :  { %v995_v43 = vadd.f32 %v991_v21, %v968_v33 }
 0x1bf   :  { %v911_v57 = vpop.f32.mrf.mxu3  ;;  %v1156_v61 = vpop.f32.mrf.mxu0 }
 0x1c0   :  { %v1182_v63 = vpop.f32.mrf.mxu2  ;;  %1424 = vmatpush.bf16.msra.mxu1 %v1912_v1 }
 0x1c1   :  { %v1209_v31 = vpop.f32.mrf.mxu1 }
 0x1c4   :  { %1425 = vmatpush.bf16.msra.mxu1 %v1911_v7 }
 0x1c7   :  { %v1018_v36 = vpop.f32.mrf.mxu3  ;;  %v1263_v38 = vpop.f32.mrf.mxu0 }
 0x1c8   :  { %v1184_v39 = vpop.f32.mrf.mxu2  ;;  %v1022_v49 = vadd.f32 %v1018_v36, %v995_v43 }
 0x1c9   :  { %v1211_v41 = vpop.f32.mrf.mxu1 }
 0x1ca   :  { %v1049_v28 = vadd.f32 %v1045_v5, %v1022_v49 }
 0x1cc   :  { %v1077_v46 = vadd.f32 %v1073_v14, %v1049_v28  ;;  %v1920_v14 = vld [vmem:[%s2476_s8] ss:$0 sm:$0xff] }
 0x1ce   :  { %v1104_v53 = vadd.f32 %v1100_v6, %v1077_v46 }
 0x1cf   :  { %v1020_v20 = vpop.f32.mrf.mxu3  ;;  %v1265_v25 = vpop.f32.mrf.mxu0 }
 0x1d7   :  { %v1127_v37 = vpop.f32.mrf.mxu3 }
 0x1d8   :  { %v1131_v56 = vadd.f32 %v1127_v37, %v1104_v53 }
 0x1da   :  { %v1158_v58 = vadd.f32 %v1154_v22, %v1131_v56 }
 0x1dc   :  { %v1186_v2 = vadd.f32 %v1182_v63, %v1158_v58 }
 0x1de   :  { %v1213_v4 = vadd.f32 %v1209_v31, %v1186_v2 }
 0x1df   :  { %v1129_v60 = vpop.f32.mrf.mxu3 }
 0x1e7   :  { %v1236_v42 = vpop.f32.mrf.mxu3 }
 0x1e8   :  { %v1240_v40 = vadd.f32 %v1236_v42, %v1213_v4 }
 0x1ea   :  { %v1267_v17 = vadd.f32 %v1263_v38, %v1240_v40 }
 0x1ec   :  { %v1272_v18 = vadd.f32 %v1918_v51, %v1267_v17 }
 0x1ee   :  { %v1273_v21 = vmax.f32 %v1272_v18, 0.0 }
 0x1ef   :  { %v1238_v54 = vpop.f32.mrf.mxu3 }
 0x1f0   :  { %v1274_v5 = vpack.c.bf16 %v1273_v21, %v1273_v21 }
 0x1f2   :  { %1823 = vmatmul.msk.bf16.vlgmr.msrb.gmra.mxu2 %vm1339_vm4, %v1274_v5 }
 0x275   :  { %v1356_v59 = vpop.f32.mrf.mxu2 }
 0x276   :  { %v1357_v8 = vadd.f32 %v1919_v50, %v1356_v59 }
 0x278   :  { %v1360_v9 = vmax.f32 %v1357_v8, 0.0 }
 0x27a   :  { %v1361_v10 = vpack.c.bf16 %v1360_v9, %v1360_v9 }
 0x27c   :  { %1844 = vmatmul.msk.bf16.vlgmr.msra.gmra.mxu1 %vm1410_vm5, %v1361_v10 }
 0x27d   :  { %v1358_v12 = vpop.f32.mrf.mxu2 }
 0x2f9   :  { %v1427_v6 = vpop.f32.mrf.mxu1 }
 0x2fa   :  { %v1428_v11 = vadd.f32 %v1920_v14, %v1427_v6 }
 0x2fc   :  { %1432 = vst.msk [vmem:[#allocation2] sm:$0x3] %vm1431_vm6, %v1428_v11 }
 0x2fd   :  { %1443 = dma.vmem_to_hbm [thread:$0]  %s1439_s12, 32, %s1441_s14, [#allocation3]  }
 0x301   :  { %v1429_v13 = vpop.f32.mrf.mxu1 }
 0x302   :  { %1945 = dma.done.wait [#allocation3], 32  }
 0x303   :  { %1946 = vsyncadd [#allocation3], 4294967264 }
 0x304   :  { %1448 = vsyncpa [#allocation3], 1 }

</bundles_post_ra>
